<compile_context>
chip_gen: v5e
topology: v5e:2x2
jax: 0.10.0
libtpu: 0.0.40
codegen_flags: <defaults>
</compile_context>

<pallas_src>
import jax
import jax.numpy as jnp
from jax.experimental import pallas as pl
from jax.experimental.pallas import tpu as pltpu


def _make_kernel(N, H, W, Cin, Cmid, Cout, L):
    """Build the fused kernel for static shapes.

    Data layout inside the kernel (channel on sublanes, pixels on lanes):
      x_ref   : (Cin,  Mp)  bf16   spatially zero-padded, per-image lane-padded
      valid   : (1,    Mp)  f32    1.0 at interior (real) pixels, 0.0 at halo/pad
      w1_ref  : (Cmid, 9*Cin) bf16 im2col weights, column order (ky, kx, cin)
      g1/b1   : (Cmid, 1)   f32    BN1 gamma / beta
      w2_ref  : (Cout, 9*Cmid) bf16
      g2/b2   : (Cout, 1)   f32
      o_ref   : (Cout, Mp)  f32    lane-dense output (interior sliced in wrapper)
      p1_ref  : (9*Cin, Mp) bf16   VMEM scratch: conv1 im2col patches
      p2_ref  : (9*Cmid, Mp) bf16  VMEM scratch: conv2 im2col patches
    """
    Wp = W + 2
    Mp = N * L
    M = N * H * W
    eps = 1e-5
    # Tap t = ky*3 + kx reads flat pixel m + s_t with s_t = (ky-1)*Wp + (kx-1).
    # pltpu.roll(x, shift)[m] == x[(m - shift) % Mp], so shift_t = (-s_t) % Mp.
    shifts = [(-((ky - 1) * Wp + (kx - 1))) % Mp
              for ky in range(3) for kx in range(3)]

    def kernel(x_ref, valid_ref, w1_ref, g1_ref, b1_ref,
               w2_ref, g2_ref, b2_ref, o_ref, p1_ref, p2_ref):
        valid = valid_ref[...]                      # (1, Mp) f32

        def im2col(src_f32, p_ref, c):
            # src_f32: (c, Mp) f32 with zero halo/pad columns.
            # Each tap is a cyclic lane roll (XLU) of the whole image stack;
            # interior output pixels only ever read inside their own image's
            # padded plane, so the wrap-around never reaches a valid output and
            # no per-tap masking or buffer zeroing is needed.  Taps are stored
            # as full-lane-width row blocks, cast to bf16 at store time.
            for t, shift in enumerate(shifts):
                tap = src_f32 if shift == 0 else pltpu.roll(src_f32, shift, 1)
                p_ref[t * c:(t + 1) * c, :] = tap.astype(jnp.bfloat16)
            return p_ref[...]                       # (9*c, Mp) bf16

        def bn_relu(acc, g, b):
            # Training-mode batch stats over the M real pixels only (masked by
            # `valid`), single pass: var = E[x^2] - mean^2 (biased).  Dense lane
            # reduces over the Mp axis; all math in f32 (v5e-safe).
            # TODO(synk): Welford / two-pass variance at real sizes.
            accm = acc * valid
            inv_m = 1.0 / float(M)
            mean = jnp.sum(accm, axis=1, keepdims=True) * inv_m      # (C, 1)
            ex2 = jnp.sum(accm * accm, axis=1, keepdims=True) * inv_m
            var = ex2 - mean * mean
            scale = jax.lax.rsqrt(var + eps) * g
            shift = b - mean * scale
            return jnp.maximum(acc * scale + shift, 0.0)

        # Tiny one-off upcast so the lane rolls operate on plain f32 layouts.
        xf = x_ref[...].astype(jnp.float32)                          # (Cin, Mp)

        # ---- conv1: one deep-K matmul (Cmid, 9*Cin) @ (9*Cin, Mp) -----------
        acc1 = jnp.dot(w1_ref[...], im2col(xf, p1_ref, Cin),
                       preferred_element_type=jnp.float32)           # (Cmid, Mp)
        # Zero the halo/pad columns so they act as conv2's zero padding.
        y1 = bn_relu(acc1, g1_ref[...], b1_ref[...]) * valid

        # ---- conv2: one deep-K matmul (Cout, 9*Cmid) @ (9*Cmid, Mp) ----------
        acc2 = jnp.dot(w2_ref[...], im2col(y1, p2_ref, Cmid),
                       preferred_element_type=jnp.float32)           # (Cout, Mp)
        y2 = bn_relu(acc2, g2_ref[...], b2_ref[...])

        o_ref[...] = y2.astype(o_ref.dtype)                          # lane-dense

    return kernel


@jax.jit
def double_conv(x_nchw, w1_oihw, g1, b1, w2_oihw, g2, b2):
    """DoubleConv forward. x_nchw: (N, Cin, H, W) float32 -> (N, Cout, H, W)."""
    N, Cin, H, W = x_nchw.shape
    Cmid = w1_oihw.shape[0]
    Cout = w2_oihw.shape[0]
    Hp, Wp = H + 2, W + 2
    L = ((Hp * Wp + 127) // 128) * 128      # per-image flat plane, lane-aligned
    Mp = N * L

    # Spatial zero-pad (this IS padding=1), channels -> sublanes, pixels -> lanes,
    # per-image plane padded with zeros up to a multiple of 128 lanes, bf16 input.
    xp = jnp.pad(x_nchw, ((0, 0), (0, 0), (1, 1), (1, 1)))           # (N,Cin,Hp,Wp)
    xp = jnp.transpose(xp, (1, 0, 2, 3)).reshape(Cin, N, Hp * Wp)
    xp = jnp.pad(xp, ((0, 0), (0, 0), (0, L - Hp * Wp)))
    x_flat = xp.reshape(Cin, Mp).astype(jnp.bfloat16)

    # Interior-pixel mask (exactly N*H*W ones).
    valid = jnp.pad(jnp.ones((N, H, W), jnp.float32), ((0, 0), (1, 1), (1, 1)))
    valid = jnp.pad(valid.reshape(N, Hp * Wp), ((0, 0), (0, L - Hp * Wp)))
    valid = valid.reshape(1, Mp)

    # OIHW -> (O, ky, kx, I) -> (O, 9*I): im2col weights for Y = W @ P, bf16 MXU
    # operands (accumulation inside the kernel stays f32).
    w1t = jnp.transpose(w1_oihw, (0, 2, 3, 1)).reshape(Cmid, 9 * Cin)
    w2t = jnp.transpose(w2_oihw, (0, 2, 3, 1)).reshape(Cout, 9 * Cmid)

    out_flat = pl.pallas_call(
        _make_kernel(N, H, W, Cin, Cmid, Cout, L),
        out_shape=jax.ShapeDtypeStruct((Cout, Mp), jnp.float32),
        in_specs=[pl.BlockSpec(memory_space=pltpu.MemorySpace.VMEM)] * 8,
        out_specs=pl.BlockSpec(memory_space=pltpu.MemorySpace.VMEM),
        scratch_shapes=[pltpu.VMEM((9 * Cin, Mp), jnp.bfloat16),
                        pltpu.VMEM((9 * Cmid, Mp), jnp.bfloat16)],
    )(x_flat, valid,
      w1t.astype(jnp.bfloat16),
      g1.reshape(Cmid, 1).astype(jnp.float32),
      b1.reshape(Cmid, 1).astype(jnp.float32),
      w2t.astype(jnp.bfloat16),
      g2.reshape(Cout, 1).astype(jnp.float32),
      b2.reshape(Cout, 1).astype(jnp.float32))

    # Drop the lane padding and the conv halo, restore NCHW.
    out = out_flat.reshape(Cout, N, L)[:, :, :Hp * Wp].reshape(Cout, N, Hp, Wp)
    out = out[:, :, 1:-1, 1:-1]
    return jnp.transpose(out, (1, 0, 2, 3))


def reference_double_conv(x, w1, g1, b1, w2, g2, b2, eps=1e-5):
    """Pure-JAX f32 reference (same training-mode BN semantics)."""
    def conv(z, w):
        return jax.lax.conv_general_dilated(
            z, w, window_strides=(1, 1), padding=((1, 1), (1, 1)),
            dimension_numbers=("NCHW", "OIHW", "NCHW"))

    def bn_relu(z, g, b):
        mean = jnp.mean(z, axis=(0, 2, 3), keepdims=True)
        var = jnp.mean(jnp.square(z - mean), axis=(0, 2, 3), keepdims=True)
        y = (z - mean) * jax.lax.rsqrt(var + eps)
        y = y * g.reshape(1, -1, 1, 1) + b.reshape(1, -1, 1, 1)
        return jnp.maximum(y, 0.0)

    y = bn_relu(conv(x, w1), g1, b1)
    return bn_relu(conv(y, w2), g2, b2)


if __name__ == "__main__":
    # Module config: DoubleConv(in_channels=4, out_channels=8) -> mid_channels=8
    N, Cin, H, W = 2, 4, 16, 16
    Cmid, Cout = 8, 8

    key = jax.random.PRNGKey(0)
    kx, k1, k2 = jax.random.split(key, 3)

    x = jax.random.normal(kx, (N, Cin, H, W), dtype=jnp.float32)

    # Deterministic conv weight init (kaiming-uniform-like bound = 1/sqrt(fan_in))
    bound1 = 1.0 / jnp.sqrt(Cin * 3 * 3)
    bound2 = 1.0 / jnp.sqrt(Cmid * 3 * 3)
    w1 = jax.random.uniform(k1, (Cmid, Cin, 3, 3), jnp.float32, -bound1, bound1)
    w2 = jax.random.uniform(k2, (Cout, Cmid, 3, 3), jnp.float32, -bound2, bound2)

    # BatchNorm2d default init: gamma=1, beta=0
    g1 = jnp.ones((Cmid,), jnp.float32)
    b1 = jnp.zeros((Cmid,), jnp.float32)
    g2 = jnp.ones((Cout,), jnp.float32)
    b2 = jnp.zeros((Cout,), jnp.float32)

    out = double_conv(x, w1, g1, b1, w2, g2, b2)
    out = jax.block_until_ready(out)

    ref = jax.block_until_ready(reference_double_conv(x, w1, g1, b1, w2, g2, b2))
    assert out.shape == (N, Cout, H, W), out.shape
    # bf16 MXU operands (f32 accumulation) introduce ~1e-2-level deviations vs
    # the pure-f32 reference, hence the relaxed tolerance.
    assert jnp.allclose(out, ref, atol=5e-2, rtol=5e-2), float(
        jnp.max(jnp.abs(out - ref)))

    print("KERNEL_OK")
</pallas_src>

<mosaic_0001>
module attributes {stable_mosaic.version = 11 : i64} {
  func.func @kernel(%arg0: memref<4x768xbf16, #tpu.memory_space<vmem>>, %arg1: memref<1x768xf32, #tpu.memory_space<vmem>>, %arg2: memref<8x36xbf16, #tpu.memory_space<vmem>>, %arg3: memref<8x1xf32, #tpu.memory_space<vmem>>, %arg4: memref<8x1xf32, #tpu.memory_space<vmem>>, %arg5: memref<8x72xbf16, #tpu.memory_space<vmem>>, %arg6: memref<8x1xf32, #tpu.memory_space<vmem>>, %arg7: memref<8x1xf32, #tpu.memory_space<vmem>>, %arg8: memref<8x768xf32, #tpu.memory_space<vmem>>, %arg9: memref<36x768xbf16, #tpu.memory_space<vmem>>, %arg10: memref<72x768xbf16, #tpu.memory_space<vmem>>) attributes {dimension_semantics = [], scalar_prefetch = 0 : i64, scratch_operands = 2 : i64, tpu.core_type = #tpu.core_type<tc>} {
    %c0 = arith.constant 0 : index
    %c0_0 = arith.constant 0 : index
    %0 = vector.load %arg1[%c0, %c0_0] : memref<1x768xf32, #tpu.memory_space<vmem>>, vector<1x768xf32>
    %c0_1 = arith.constant 0 : index
    %c0_2 = arith.constant 0 : index
    %1 = vector.load %arg0[%c0_1, %c0_2] : memref<4x768xbf16, #tpu.memory_space<vmem>>, vector<4x768xbf16>
    %2 = arith.extf %1 : vector<4x768xbf16> to vector<4x768xf32>
    %c0_3 = arith.constant 0 : index
    %c0_4 = arith.constant 0 : index
    %3 = vector.load %arg2[%c0_3, %c0_4] : memref<8x36xbf16, #tpu.memory_space<vmem>>, vector<8x36xbf16>
    %c19_i32 = arith.constant 19 : i32
    %4 = tpu.dynamic_rotate %2 by %c19_i32 dim 1 : vector<4x768xf32>, i32 -> vector<4x768xf32>
    %5 = arith.truncf %4 : vector<4x768xf32> to vector<4x768xbf16>
    %c0_5 = arith.constant 0 : index
    %c0_6 = arith.constant 0 : index
    %6 = vector.load %arg9[%c0_5, %c0_6] : memref<36x768xbf16, #tpu.memory_space<vmem>>, vector<4x768xbf16>
    tpu.vector_store %arg9[%c0_5, %c0_6], %5 {strides = array<i32>} : memref<36x768xbf16, #tpu.memory_space<vmem>>, vector<4x768xbf16>,
    %c18_i32 = arith.constant 18 : i32
    %7 = tpu.dynamic_rotate %2 by %c18_i32 dim 1 : vector<4x768xf32>, i32 -> vector<4x768xf32>
    %8 = arith.truncf %7 : vector<4x768xf32> to vector<4x768xbf16>
    %c4 = arith.constant 4 : index
    %c0_7 = arith.constant 0 : index
    %9 = vector.load %arg9[%c4, %c0_7] : memref<36x768xbf16, #tpu.memory_space<vmem>>, vector<4x768xbf16>
    tpu.vector_store %arg9[%c4, %c0_7], %8 {strides = array<i32>} : memref<36x768xbf16, #tpu.memory_space<vmem>>, vector<4x768xbf16>,
    %c17_i32 = arith.constant 17 : i32
    %10 = tpu.dynamic_rotate %2 by %c17_i32 dim 1 : vector<4x768xf32>, i32 -> vector<4x768xf32>
    %11 = arith.truncf %10 : vector<4x768xf32> to vector<4x768xbf16>
    %c8 = arith.constant 8 : index
    %c0_8 = arith.constant 0 : index
    %12 = vector.load %arg9[%c8, %c0_8] : memref<36x768xbf16, #tpu.memory_space<vmem>>, vector<4x768xbf16>
    tpu.vector_store %arg9[%c8, %c0_8], %11 {strides = array<i32>} : memref<36x768xbf16, #tpu.memory_space<vmem>>, vector<4x768xbf16>,
    %c1_i32 = arith.constant 1 : i32
    %13 = tpu.dynamic_rotate %2 by %c1_i32 dim 1 : vector<4x768xf32>, i32 -> vector<4x768xf32>
    %14 = arith.truncf %13 : vector<4x768xf32> to vector<4x768xbf16>
    %c12 = arith.constant 12 : index
    %c0_9 = arith.constant 0 : index
    %15 = vector.load %arg9[%c12, %c0_9] : memref<36x768xbf16, #tpu.memory_space<vmem>>, vector<4x768xbf16>
    tpu.vector_store %arg9[%c12, %c0_9], %14 {strides = array<i32>} : memref<36x768xbf16, #tpu.memory_space<vmem>>, vector<4x768xbf16>,
    %16 = arith.truncf %2 : vector<4x768xf32> to vector<4x768xbf16>
    %c16 = arith.constant 16 : index
    %c0_10 = arith.constant 0 : index
    %17 = vector.load %arg9[%c16, %c0_10] : memref<36x768xbf16, #tpu.memory_space<vmem>>, vector<4x768xbf16>
    tpu.vector_store %arg9[%c16, %c0_10], %16 {strides = array<i32>} : memref<36x768xbf16, #tpu.memory_space<vmem>>, vector<4x768xbf16>,
    %c767_i32 = arith.constant 767 : i32
    %18 = tpu.dynamic_rotate %2 by %c767_i32 dim 1 : vector<4x768xf32>, i32 -> vector<4x768xf32>
    %19 = arith.truncf %18 : vector<4x768xf32> to vector<4x768xbf16>
    %c20 = arith.constant 20 : index
    %c0_11 = arith.constant 0 : index
    %20 = vector.load %arg9[%c20, %c0_11] : memref<36x768xbf16, #tpu.memory_space<vmem>>, vector<4x768xbf16>
    tpu.vector_store %arg9[%c20, %c0_11], %19 {strides = array<i32>} : memref<36x768xbf16, #tpu.memory_space<vmem>>, vector<4x768xbf16>,
    %c751_i32 = arith.constant 751 : i32
    %21 = tpu.dynamic_rotate %2 by %c751_i32 dim 1 : vector<4x768xf32>, i32 -> vector<4x768xf32>
    %22 = arith.truncf %21 : vector<4x768xf32> to vector<4x768xbf16>
    %c24 = arith.constant 24 : index
    %c0_12 = arith.constant 0 : index
    %23 = vector.load %arg9[%c24, %c0_12] : memref<36x768xbf16, #tpu.memory_space<vmem>>, vector<4x768xbf16>
    tpu.vector_store %arg9[%c24, %c0_12], %22 {strides = array<i32>} : memref<36x768xbf16, #tpu.memory_space<vmem>>, vector<4x768xbf16>,
    %c750_i32 = arith.constant 750 : i32
    %24 = tpu.dynamic_rotate %2 by %c750_i32 dim 1 : vector<4x768xf32>, i32 -> vector<4x768xf32>
    %25 = arith.truncf %24 : vector<4x768xf32> to vector<4x768xbf16>
    %c28 = arith.constant 28 : index
    %c0_13 = arith.constant 0 : index
    %26 = vector.load %arg9[%c28, %c0_13] : memref<36x768xbf16, #tpu.memory_space<vmem>>, vector<4x768xbf16>
    tpu.vector_store %arg9[%c28, %c0_13], %25 {strides = array<i32>} : memref<36x768xbf16, #tpu.memory_space<vmem>>, vector<4x768xbf16>,
    %c749_i32 = arith.constant 749 : i32
    %27 = tpu.dynamic_rotate %2 by %c749_i32 dim 1 : vector<4x768xf32>, i32 -> vector<4x768xf32>
    %28 = arith.truncf %27 : vector<4x768xf32> to vector<4x768xbf16>
    %c32 = arith.constant 32 : index
    %c0_14 = arith.constant 0 : index
    %29 = vector.load %arg9[%c32, %c0_14] : memref<36x768xbf16, #tpu.memory_space<vmem>>, vector<4x768xbf16>
    tpu.vector_store %arg9[%c32, %c0_14], %28 {strides = array<i32>} : memref<36x768xbf16, #tpu.memory_space<vmem>>, vector<4x768xbf16>,
    %c0_15 = arith.constant 0 : index
    %c0_16 = arith.constant 0 : index
    %30 = vector.load %arg9[%c0_15, %c0_16] : memref<36x768xbf16, #tpu.memory_space<vmem>>, vector<36x768xbf16>
    %cst = arith.constant dense<0.000000e+00> : vector<8x768xf32>
    %31 = tpu.matmul %3, %30, %cst {dimension_numbers = #tpu.dot_dimension_numbers<[1], [0], [0], [1], [0, 0, 1, 1], [], []>} : vector<8x36xbf16>, vector<36x768xbf16>, vector<8x768xf32> -> vector<8x768xf32>
    %c0_17 = arith.constant 0 : index
    %c0_18 = arith.constant 0 : index
    %32 = vector.load %arg3[%c0_17, %c0_18] : memref<8x1xf32, #tpu.memory_space<vmem>>, vector<8x1xf32>
    %c0_19 = arith.constant 0 : index
    %c0_20 = arith.constant 0 : index
    %33 = vector.load %arg4[%c0_19, %c0_20] : memref<8x1xf32, #tpu.memory_space<vmem>>, vector<8x1xf32>
    %34 = vector.broadcast %0 : vector<1x768xf32> to vector<8x768xf32>
    %35 = arith.mulf %31, %34 : vector<8x768xf32>
    %cst_21 = arith.constant dense<0.000000e+00> : vector<8xf32>
    %36 = vector.multi_reduction <add>, %35, %cst_21 [1] : vector<8x768xf32> to vector<8xf32>
    %37 = vector.shape_cast %36 : vector<8xf32> to vector<8x1xf32>
    %cst_22 = arith.constant 0.001953125 : f32
    %38 = vector.broadcast %cst_22 : f32 to vector<8x1xf32>
    %39 = arith.mulf %37, %38 : vector<8x1xf32>
    %40 = arith.mulf %35, %35 : vector<8x768xf32>
    %cst_23 = arith.constant dense<0.000000e+00> : vector<8xf32>
    %41 = vector.multi_reduction <add>, %40, %cst_23 [1] : vector<8x768xf32> to vector<8xf32>
    %42 = vector.shape_cast %41 : vector<8xf32> to vector<8x1xf32>
    %cst_24 = arith.constant 0.001953125 : f32
    %43 = vector.broadcast %cst_24 : f32 to vector<8x1xf32>
    %44 = arith.mulf %42, %43 : vector<8x1xf32>
    %45 = arith.mulf %39, %39 : vector<8x1xf32>
    %46 = arith.subf %44, %45 : vector<8x1xf32>
    %cst_25 = arith.constant 9.99999974E-6 : f32
    %47 = vector.broadcast %cst_25 : f32 to vector<8x1xf32>
    %48 = arith.addf %46, %47 : vector<8x1xf32>
    %49 = math.rsqrt %48 : vector<8x1xf32>
    %50 = arith.mulf %49, %32 : vector<8x1xf32>
    %51 = arith.mulf %39, %50 : vector<8x1xf32>
    %52 = arith.subf %33, %51 : vector<8x1xf32>
    %53 = vector.broadcast %50 : vector<8x1xf32> to vector<8x768xf32>
    %54 = arith.mulf %31, %53 : vector<8x768xf32>
    %55 = vector.broadcast %52 : vector<8x1xf32> to vector<8x768xf32>
    %56 = arith.addf %54, %55 : vector<8x768xf32>
    %cst_26 = arith.constant 0.000000e+00 : f32
    %57 = vector.broadcast %cst_26 : f32 to vector<8x768xf32>
    %58 = arith.maximumf %56, %57 : vector<8x768xf32>
    %59 = vector.broadcast %0 : vector<1x768xf32> to vector<8x768xf32>
    %60 = arith.mulf %58, %59 : vector<8x768xf32>
    %c0_27 = arith.constant 0 : index
    %c0_28 = arith.constant 0 : index
    %61 = vector.load %arg5[%c0_27, %c0_28] : memref<8x72xbf16, #tpu.memory_space<vmem>>, vector<8x72xbf16>
    %c19_i32_29 = arith.constant 19 : i32
    %62 = tpu.dynamic_rotate %60 by %c19_i32_29 dim 1 : vector<8x768xf32>, i32 -> vector<8x768xf32>
    %63 = arith.truncf %62 : vector<8x768xf32> to vector<8x768xbf16>
    %c0_30 = arith.constant 0 : index
    %c0_31 = arith.constant 0 : index
    %64 = vector.load %arg10[%c0_30, %c0_31] : memref<72x768xbf16, #tpu.memory_space<vmem>>, vector<8x768xbf16>
    tpu.vector_store %arg10[%c0_30, %c0_31], %63 {strides = array<i32>} : memref<72x768xbf16, #tpu.memory_space<vmem>>, vector<8x768xbf16>,
    %c18_i32_32 = arith.constant 18 : i32
    %65 = tpu.dynamic_rotate %60 by %c18_i32_32 dim 1 : vector<8x768xf32>, i32 -> vector<8x768xf32>
    %66 = arith.truncf %65 : vector<8x768xf32> to vector<8x768xbf16>
    %c8_33 = arith.constant 8 : index
    %c0_34 = arith.constant 0 : index
    %67 = vector.load %arg10[%c8_33, %c0_34] : memref<72x768xbf16, #tpu.memory_space<vmem>>, vector<8x768xbf16>
    tpu.vector_store %arg10[%c8_33, %c0_34], %66 {strides = array<i32>} : memref<72x768xbf16, #tpu.memory_space<vmem>>, vector<8x768xbf16>,
    %c17_i32_35 = arith.constant 17 : i32
    %68 = tpu.dynamic_rotate %60 by %c17_i32_35 dim 1 : vector<8x768xf32>, i32 -> vector<8x768xf32>
    %69 = arith.truncf %68 : vector<8x768xf32> to vector<8x768xbf16>
    %c16_36 = arith.constant 16 : index
    %c0_37 = arith.constant 0 : index
    %70 = vector.load %arg10[%c16_36, %c0_37] : memref<72x768xbf16, #tpu.memory_space<vmem>>, vector<8x768xbf16>
    tpu.vector_store %arg10[%c16_36, %c0_37], %69 {strides = array<i32>} : memref<72x768xbf16, #tpu.memory_space<vmem>>, vector<8x768xbf16>,
    %c1_i32_38 = arith.constant 1 : i32
    %71 = tpu.dynamic_rotate %60 by %c1_i32_38 dim 1 : vector<8x768xf32>, i32 -> vector<8x768xf32>
    %72 = arith.truncf %71 : vector<8x768xf32> to vector<8x768xbf16>
    %c24_39 = arith.constant 24 : index
    %c0_40 = arith.constant 0 : index
    %73 = vector.load %arg10[%c24_39, %c0_40] : memref<72x768xbf16, #tpu.memory_space<vmem>>, vector<8x768xbf16>
    tpu.vector_store %arg10[%c24_39, %c0_40], %72 {strides = array<i32>} : memref<72x768xbf16, #tpu.memory_space<vmem>>, vector<8x768xbf16>,
    %74 = arith.truncf %60 : vector<8x768xf32> to vector<8x768xbf16>
    %c32_41 = arith.constant 32 : index
    %c0_42 = arith.constant 0 : index
    %75 = vector.load %arg10[%c32_41, %c0_42] : memref<72x768xbf16, #tpu.memory_space<vmem>>, vector<8x768xbf16>
    tpu.vector_store %arg10[%c32_41, %c0_42], %74 {strides = array<i32>} : memref<72x768xbf16, #tpu.memory_space<vmem>>, vector<8x768xbf16>,
    %c767_i32_43 = arith.constant 767 : i32
    %76 = tpu.dynamic_rotate %60 by %c767_i32_43 dim 1 : vector<8x768xf32>, i32 -> vector<8x768xf32>
    %77 = arith.truncf %76 : vector<8x768xf32> to vector<8x768xbf16>
    %c40 = arith.constant 40 : index
    %c0_44 = arith.constant 0 : index
    %78 = vector.load %arg10[%c40, %c0_44] : memref<72x768xbf16, #tpu.memory_space<vmem>>, vector<8x768xbf16>
    tpu.vector_store %arg10[%c40, %c0_44], %77 {strides = array<i32>} : memref<72x768xbf16, #tpu.memory_space<vmem>>, vector<8x768xbf16>,
    %c751_i32_45 = arith.constant 751 : i32
    %79 = tpu.dynamic_rotate %60 by %c751_i32_45 dim 1 : vector<8x768xf32>, i32 -> vector<8x768xf32>
    %80 = arith.truncf %79 : vector<8x768xf32> to vector<8x768xbf16>
    %c48 = arith.constant 48 : index
    %c0_46 = arith.constant 0 : index
    %81 = vector.load %arg10[%c48, %c0_46] : memref<72x768xbf16, #tpu.memory_space<vmem>>, vector<8x768xbf16>
    tpu.vector_store %arg10[%c48, %c0_46], %80 {strides = array<i32>} : memref<72x768xbf16, #tpu.memory_space<vmem>>, vector<8x768xbf16>,
    %c750_i32_47 = arith.constant 750 : i32
    %82 = tpu.dynamic_rotate %60 by %c750_i32_47 dim 1 : vector<8x768xf32>, i32 -> vector<8x768xf32>
    %83 = arith.truncf %82 : vector<8x768xf32> to vector<8x768xbf16>
    %c56 = arith.constant 56 : index
    %c0_48 = arith.constant 0 : index
    %84 = vector.load %arg10[%c56, %c0_48] : memref<72x768xbf16, #tpu.memory_space<vmem>>, vector<8x768xbf16>
    tpu.vector_store %arg10[%c56, %c0_48], %83 {strides = array<i32>} : memref<72x768xbf16, #tpu.memory_space<vmem>>, vector<8x768xbf16>,
    %c749_i32_49 = arith.constant 749 : i32
    %85 = tpu.dynamic_rotate %60 by %c749_i32_49 dim 1 : vector<8x768xf32>, i32 -> vector<8x768xf32>
    %86 = arith.truncf %85 : vector<8x768xf32> to vector<8x768xbf16>
    %c64 = arith.constant 64 : index
    %c0_50 = arith.constant 0 : index
    %87 = vector.load %arg10[%c64, %c0_50] : memref<72x768xbf16, #tpu.memory_space<vmem>>, vector<8x768xbf16>
    tpu.vector_store %arg10[%c64, %c0_50], %86 {strides = array<i32>} : memref<72x768xbf16, #tpu.memory_space<vmem>>, vector<8x768xbf16>,
    %c0_51 = arith.constant 0 : index
    %c0_52 = arith.constant 0 : index
    %88 = vector.load %arg10[%c0_51, %c0_52] : memref<72x768xbf16, #tpu.memory_space<vmem>>, vector<72x768xbf16>
    %cst_53 = arith.constant dense<0.000000e+00> : vector<8x768xf32>
    %89 = tpu.matmul %61, %88, %cst_53 {dimension_numbers = #tpu.dot_dimension_numbers<[1], [0], [0], [1], [0, 0, 1, 1], [], []>} : vector<8x72xbf16>, vector<72x768xbf16>, vector<8x768xf32> -> vector<8x768xf32>
    %c0_54 = arith.constant 0 : index
    %c0_55 = arith.constant 0 : index
    %90 = vector.load %arg6[%c0_54, %c0_55] : memref<8x1xf32, #tpu.memory_space<vmem>>, vector<8x1xf32>
    %c0_56 = arith.constant 0 : index
    %c0_57 = arith.constant 0 : index
    %91 = vector.load %arg7[%c0_56, %c0_57] : memref<8x1xf32, #tpu.memory_space<vmem>>, vector<8x1xf32>
    %92 = vector.broadcast %0 : vector<1x768xf32> to vector<8x768xf32>
    %93 = arith.mulf %89, %92 : vector<8x768xf32>
    %cst_58 = arith.constant dense<0.000000e+00> : vector<8xf32>
    %94 = vector.multi_reduction <add>, %93, %cst_58 [1] : vector<8x768xf32> to vector<8xf32>
    %95 = vector.shape_cast %94 : vector<8xf32> to vector<8x1xf32>
    %cst_59 = arith.constant 0.001953125 : f32
    %96 = vector.broadcast %cst_59 : f32 to vector<8x1xf32>
    %97 = arith.mulf %95, %96 : vector<8x1xf32>
    %98 = arith.mulf %93, %93 : vector<8x768xf32>
    %cst_60 = arith.constant dense<0.000000e+00> : vector<8xf32>
    %99 = vector.multi_reduction <add>, %98, %cst_60 [1] : vector<8x768xf32> to vector<8xf32>
    %100 = vector.shape_cast %99 : vector<8xf32> to vector<8x1xf32>
    %cst_61 = arith.constant 0.001953125 : f32
    %101 = vector.broadcast %cst_61 : f32 to vector<8x1xf32>
    %102 = arith.mulf %100, %101 : vector<8x1xf32>
    %103 = arith.mulf %97, %97 : vector<8x1xf32>
    %104 = arith.subf %102, %103 : vector<8x1xf32>
    %cst_62 = arith.constant 9.99999974E-6 : f32
    %105 = vector.broadcast %cst_62 : f32 to vector<8x1xf32>
    %106 = arith.addf %104, %105 : vector<8x1xf32>
    %107 = math.rsqrt %106 : vector<8x1xf32>
    %108 = arith.mulf %107, %90 : vector<8x1xf32>
    %109 = arith.mulf %97, %108 : vector<8x1xf32>
    %110 = arith.subf %91, %109 : vector<8x1xf32>
    %111 = vector.broadcast %108 : vector<8x1xf32> to vector<8x768xf32>
    %112 = arith.mulf %89, %111 : vector<8x768xf32>
    %113 = vector.broadcast %110 : vector<8x1xf32> to vector<8x768xf32>
    %114 = arith.addf %112, %113 : vector<8x768xf32>
    %cst_63 = arith.constant 0.000000e+00 : f32
    %115 = vector.broadcast %cst_63 : f32 to vector<8x768xf32>
    %116 = arith.maximumf %114, %115 : vector<8x768xf32>
    %c0_64 = arith.constant 0 : index
    %c0_65 = arith.constant 0 : index
    %117 = vector.load %arg8[%c0_64, %c0_65] : memref<8x768xf32, #tpu.memory_space<vmem>>, vector<8x768xf32>
    tpu.vector_store %arg8[%c0_64, %c0_65], %116 {strides = array<i32>} : memref<8x768xf32, #tpu.memory_space<vmem>>, vector<8x768xf32>,
    return
  }
}

</mosaic_0001>

<bundles_post_ra>
// kernel: double_conv.1
= control target key start
LH: loop header
LB: loop body
LE: loop exit
PB: predicated region body
PF: predicated region fallthrough
CT: control target
= control target key end

     0   :  { %s1676_s9 = smov 18   ;;  %s1677_s10 = smov 17   ;;  %vm522_vm8 = vcmask 1041408   ;;  %vm518_vm9 = vcmask 293888   ;;  %vm1077_vm13 = vcmask 1043456   ;;  %vm1073_vm14 = vcmask 588800   ;;  %s2352_s0 = inlined_call_operand.vmem [shape: bf16[4,768], index: 0, kind: input, shape index: {}]   ;;  %s2353_s2 = inlined_call_operand.vmem [shape: bf16[8,36], index: 2, kind: input, shape index: {}]   ;;  %s2354_s1 = inlined_call_operand.vmem [shape: f32[1,768], index: 1, kind: input, shape index: {}]   ;;  %s2355_s3 = inlined_call_operand.vmem [shape: f32[8,1], index: 3, kind: input, shape index: {}]   ;;  %s2356_s4 = inlined_call_operand.vmem [shape: f32[8,1], index: 4, kind: input, shape index: {}]   ;;  %s2357_s5 = inlined_call_operand.vmem [shape: bf16[8,72], index: 5, kind: input, shape index: {}]   ;;  %s2358_s6 = inlined_call_operand.vmem [shape: f32[8,1], index: 6, kind: input, shape index: {}]   ;;  %s2359_s7 = inlined_call_operand.vmem [shape: f32[8,1], index: 7, kind: input, shape index: {}]   ;;  %s2360_s8 = inlined_call_operand.vmem [shape: f32[8,768], index: 8, kind: output, shape index: {}]  }
   0x1   :  { %v31_v0 = vld [vmem:[%s2352_s0] sm:$0xff]  ;;  %v32_v1 = vld [vmem:[%s2352_s0 + $0x8] sm:$0xf]  ;;  %s1675_s0 = smov 19   ;;  %s1678_s11 = smov 1  }
   0x2   :  { %v1735_v2 = vunpack.c.l.bf16 %v31_v0  ;;  %v1737_v3 = vunpack.c.h.bf16 %v31_v0  ;;  %v1739_v4 = vunpack.c.l.bf16 %v32_v1  ;;  %s1679_s12 = smov 127   ;;  %s1680_s13 = smov 111  }
   0x3   :  { %s1681_s14 = smov 110   ;;  %s1682_s15 = smov 109  }
   0x4   :  { %40 = vst [vmem:[#allocation1] ss:$2 sm:$0xff] %v1735_v2 }
   0x5   :  { %42 = vst [vmem:[#allocation1 + $0x10] ss:$2 sm:$0xff] %v1737_v3 }
   0x6   :  { %44 = vst [vmem:[#allocation1 + $0x20] ss:$2 sm:$0xff] %v1739_v4 }
   0xb   :  { %v45_v5 = vld.sshfl [vmem:[#allocation1] sm:$0xff pattern:$0x75316420]  ;;  %v46_v6 = vld.sshfl [vmem:[#allocation1 + $0x8] sm:$0xff pattern:$0x75316420] }
   0xc   :  { %v1459_v7 = vpack.i.bf16 %v46_v6, %v45_v5  ;;  %84 = vst [vmem:[#allocation1] ss:$2 sm:$0xff] %v1735_v2  ;;  %v47_v8 = vld.sshfl [vmem:[#allocation1 + $0x10] sm:$0xff pattern:$0x75316420] }
   0xd   :  { %v1745_v9 = vld.sshfl [vmem:[#allocation1 + $0x18] sm:$0xff pattern:$0x75316420]  ;;  %v1747_v10 = vld.sshfl [vmem:[#allocation1 + $0x20] sm:$0xff pattern:$0x75316420] }
   0xe   :  { %1460 = vrot.lane.b32.xlu1 %v1459_v7, %s1675_s0  ;;  %v50_v11 = vld.sshfl [vmem:[#allocation1 + $0x28] sm:$0xff pattern:$0x75316420]  ;;  %86 = vst [vmem:[#allocation1 + $0x10] ss:$2 sm:$0xff] %v1737_v3 }
   0xf   :  { %88 = vst [vmem:[#allocation1 + $0x20] ss:$2 sm:$0xff] %v1739_v4  ;;  %v1464_v12 = vpack.i.bf16 %v47_v8, %v50_v11 }
  0x11   :  { %1465 = vrot.lane.b32.xlu2 %v1464_v12, %s1675_s0 }
  0x13   :  { %v89_v13 = vld.sshfl [vmem:[#allocation1] sm:$0xff pattern:$0x75316420]  ;;  %v90_v14 = vld.sshfl [vmem:[#allocation1 + $0x8] sm:$0xff pattern:$0x75316420] }
  0x14   :  { %v1469_v15 = vpack.i.bf16 %v90_v14, %v89_v13  ;;  %135 = vst [vmem:[#allocation1] ss:$2 sm:$0xff] %v1735_v2 }
  0x15   :  { %v91_v16 = vld.sshfl [vmem:[#allocation1 + $0x10] sm:$0xff pattern:$0x75316420]  ;;  %v1754_v17 = vld.sshfl [vmem:[#allocation1 + $0x18] sm:$0xff pattern:$0x75316420] }
  0x16   :  { %1470 = vrot.lane.b32.xlu0 %v1469_v15, %s1676_s9  ;;  %v1757_v18 = vld.sshfl [vmem:[#allocation1 + $0x20] sm:$0xff pattern:$0x75316420]  ;;  %v94_v19 = vld.sshfl [vmem:[#allocation1 + $0x28] sm:$0xff pattern:$0x75316420] }
  0x17   :  { %139 = vst [vmem:[#allocation1 + $0x20] ss:$2 sm:$0xff] %v1739_v4  ;;  %v1474_v20 = vpack.i.bf16 %v91_v16, %v94_v19 }
  0x18   :  { %137 = vst [vmem:[#allocation1 + $0x10] ss:$2 sm:$0xff] %v1737_v3 }
  0x19   :  { %1475 = vrot.lane.b32.xlu1 %v1474_v20, %s1676_s9 }
  0x1b   :  { %v140_v21 = vld.sshfl [vmem:[#allocation1] sm:$0xff pattern:$0x75316420]  ;;  %v141_v22 = vld.sshfl [vmem:[#allocation1 + $0x8] sm:$0xff pattern:$0x75316420] }
  0x1c   :  { %v1479_v23 = vpack.i.bf16 %v141_v22, %v140_v21  ;;  %177 = vst [vmem:[#allocation1] ss:$2 sm:$0xff] %v1735_v2 }
  0x1e   :  { %1480 = vrot.lane.b32.xlu0 %v1479_v23, %s1677_s10  ;;  %v1764_v24 = vld.sshfl [vmem:[#allocation1 + $0x20] sm:$0xff pattern:$0x75316420]  ;;  %v145_v25 = vld.sshfl [vmem:[#allocation1 + $0x28] sm:$0xff pattern:$0x75316420] }
  0x1f   :  { %v142_v26 = vld.sshfl [vmem:[#allocation1 + $0x10] sm:$0xff pattern:$0x75316420]  ;;  %v1766_v27 = vld.sshfl [vmem:[#allocation1 + $0x18] sm:$0xff pattern:$0x75316420] }
  0x20   :  { %181 = vst [vmem:[#allocation1 + $0x20] ss:$2 sm:$0xff] %v1739_v4  ;;  %v1484_v28 = vpack.i.bf16 %v142_v26, %v145_v25 }
  0x21   :  { %179 = vst [vmem:[#allocation1 + $0x10] ss:$2 sm:$0xff] %v1737_v3 }
  0x22   :  { %1485 = vrot.lane.b32.xlu1 %v1484_v28, %s1677_s10 }
  0x23   :  { %v182_v29 = vld.sshfl [vmem:[#allocation1] sm:$0xff pattern:$0x75316420]  ;;  %v183_v30 = vld.sshfl [vmem:[#allocation1 + $0x8] sm:$0xff pattern:$0x75316420] }
  0x24   :  { %v1489_v31 = vpack.i.bf16 %v183_v30, %v182_v29  ;;  %229 = vst [vmem:[#allocation1] ss:$2 sm:$0xff] %v31_v0 }
  0x26   :  { %1490 = vrot.lane.b32.xlu2 %v1489_v31, %s1678_s11 }
  0x27   :  { %v1772_v32 = vld.sshfl [vmem:[#allocation1 + $0x20] sm:$0xff pattern:$0x75316420]  ;;  %v187_v33 = vld.sshfl [vmem:[#allocation1 + $0x28] sm:$0xff pattern:$0x75316420] }
  0x28   :  { %v184_v34 = vld.sshfl [vmem:[#allocation1 + $0x10] sm:$0xff pattern:$0x75316420]  ;;  %v1774_v35 = vld.sshfl [vmem:[#allocation1 + $0x18] sm:$0xff pattern:$0x75316420] }
  0x29   :  { %246 = vst [vmem:[#allocation1 + $0x20] ss:$2 sm:$0xff] %v1739_v4  ;;  %v1494_v36 = vpack.i.bf16 %v184_v34, %v187_v33 }
  0x2a   :  { %232 = vst [vmem:[#allocation1 + $0x10] ss:$2 sm:$0xff] %v32_v1 }
  0x2b   :  { %1495 = vrot.lane.b32.xlu0 %v1494_v36, %s1678_s11  ;;  %v233_v37 = vld.sshfl [vmem:[#allocation1] sm:$0xff pattern:$0x75643120]  ;;  %v234_v38 = vld.sshfl [vmem:[#allocation1 + $0x8] sm:$0xff pattern:$0x75643120] }
  0x2c   :  { %239 = vst [vmem:[#allocation2 + $0x30] sm:$0x33] %v233_v37 }
  0x2d   :  { %240 = vst [vmem:[#allocation2 + $0x38] sm:$0x33] %v234_v38 }
  0x2e   :  { %242 = vst [vmem:[#allocation1] ss:$2 sm:$0xff] %v1735_v2 }
  0x30   :  { %v251_v39 = vld.sshfl [vmem:[#allocation1 + $0x20] sm:$0xff pattern:$0x75316420]  ;;  %v252_v40 = vld.sshfl [vmem:[#allocation1 + $0x28] sm:$0xff pattern:$0x75316420] }
  0x31   :  { %v235_v41 = vld.sshfl [vmem:[#allocation1 + $0x10] sm:$0xff pattern:$0x75643120]  ;;  %v1499_v42 = vpack.i.bf16 %v252_v40, %v251_v39  ;;  %297 = vst [vmem:[#allocation1 + $0x20] ss:$2 sm:$0xff] %v1739_v4 }
  0x32   :  { %244 = vst [vmem:[#allocation1 + $0x10] ss:$2 sm:$0xff] %v1737_v3 }
  0x33   :  { %241 = vst [vmem:[#allocation2 + $0x40] sm:$0x33] %v235_v41  ;;  %1500 = vrot.lane.b32.xlu2 %v1499_v42, %s1679_s12 }
  0x35   :  { %v247_v43 = vld.sshfl [vmem:[#allocation1] sm:$0xff pattern:$0x75316420]  ;;  %v248_v44 = vld.sshfl [vmem:[#allocation1 + $0x8] sm:$0xff pattern:$0x75316420] }
  0x36   :  { %v1504_v45 = vpack.i.bf16 %v248_v44, %v247_v43  ;;  %293 = vst [vmem:[#allocation1] ss:$2 sm:$0xff] %v1735_v2 }
  0x38   :  { %v302_v46 = vld.sshfl [vmem:[#allocation1 + $0x20] sm:$0xff pattern:$0x75316420]  ;;  %v303_v47 = vld.sshfl [vmem:[#allocation1 + $0x28] sm:$0xff pattern:$0x75316420]  ;;  %1505 = vrot.lane.b32.xlu1 %v1504_v45, %s1679_s12 }
  0x39   :  { %v249_v48 = vld.sshfl [vmem:[#allocation1 + $0x10] sm:$0xff pattern:$0x75316420]  ;;  %v250_v49 = vld.sshfl [vmem:[#allocation1 + $0x18] sm:$0xff pattern:$0x75316420] }
  0x3a   :  { %295 = vst [vmem:[#allocation1 + $0x10] ss:$2 sm:$0xff] %v1737_v3  ;;  %v1509_v50 = vpack.i.bf16 %v250_v49, %v249_v48 }
  0x3b   :  { %339 = vst [vmem:[#allocation1 + $0x20] ss:$2 sm:$0xff] %v1739_v4 }
  0x3d   :  { %v298_v51 = vld.sshfl [vmem:[#allocation1] sm:$0xff pattern:$0x75316420]  ;;  %v299_v52 = vld.sshfl [vmem:[#allocation1 + $0x8] sm:$0xff pattern:$0x75316420] }
  0x3e   :  { %335 = vst [vmem:[#allocation1] ss:$2 sm:$0xff] %v1735_v2  ;;  %v1514_v58 = vpack.i.bf16 %v299_v52, %v298_v51 }
  0x40   :  { %1510 = vrot.lane.b32.xlu1 %v1509_v50, %s1679_s12 }
  0x41   :  { %v300_v53 = vld.sshfl [vmem:[#allocation1 + $0x10] sm:$0xff pattern:$0x75316420]  ;;  %v301_v54 = vld.sshfl [vmem:[#allocation1 + $0x18] sm:$0xff pattern:$0x75316420] }
  0x42   :  { %v344_v55 = vld.sshfl [vmem:[#allocation1 + $0x20] sm:$0xff pattern:$0x75316420]  ;;  %v345_v56 = vld.sshfl [vmem:[#allocation1 + $0x28] sm:$0xff pattern:$0x75316420]  ;;  %v1519_v57 = vpack.i.bf16 %v301_v54, %v300_v53 }
  0x43   :  { %390 = vst [vmem:[#allocation1 + $0x20] ss:$2 sm:$0xff] %v1739_v4  ;;  %v1554_v4 = vpack.i.bf16 %v303_v47, %v302_v46 }
  0x44   :  { %1520 = vrot.lane.b32.xlu2 %v1519_v57, %s1680_s13  ;;  %337 = vst [vmem:[#allocation1 + $0x10] ss:$2 sm:$0xff] %v1737_v3 }
  0x45   :  { %v340_v59 = vld.sshfl [vmem:[#allocation1] sm:$0xff pattern:$0x75316420]  ;;  %v341_v60 = vld.sshfl [vmem:[#allocation1 + $0x8] sm:$0xff pattern:$0x75316420] }
  0x46   :  { %386 = vst [vmem:[#allocation1] ss:$2 sm:$0xff] %v1735_v2  ;;  %v1524_v61 = vpack.i.bf16 %v341_v60, %v340_v59 }
  0x48   :  { %1515 = vrot.lane.b32.xlu1 %v1514_v58, %s1680_s13 }
  0x4a   :  { %v395_v62 = vld.sshfl [vmem:[#allocation1 + $0x20] sm:$0xff pattern:$0x75316420]  ;;  %v396_v63 = vld.sshfl [vmem:[#allocation1 + $0x28] sm:$0xff pattern:$0x75316420] }
  0x4b   :  { %v1534_v0 = vpack.i.bf16 %v396_v63, %v395_v62  ;;  %v342_v1 = vld.sshfl [vmem:[#allocation1 + $0x10] sm:$0xff pattern:$0x75316420]  ;;  %v343_v5 = vld.sshfl [vmem:[#allocation1 + $0x18] sm:$0xff pattern:$0x75316420] }
  0x4c   :  { %1525 = vrot.lane.b32.xlu2 %v1524_v61, %s1681_s14  ;;  %388 = vst [vmem:[#allocation1 + $0x10] ss:$2 sm:$0xff] %v1737_v3  ;;  %v1529_v2 = vpack.i.bf16 %v343_v5, %v342_v1  ;;  %v1549_v3 = vpack.i.bf16 %v345_v56, %v344_v55 }
  0x4d   :  { %1535 = vrot.lane.b32.xlu0 %v1534_v0, %s1682_s15  ;;  %v391_v6 = vld.sshfl [vmem:[#allocation1] sm:$0xff pattern:$0x75316420]  ;;  %v392_v7 = vld.sshfl [vmem:[#allocation1 + $0x8] sm:$0xff pattern:$0x75316420] }
  0x4e   :  { %v1539_v8 = vpack.i.bf16 %v392_v7, %v391_v6 }
  0x50   :  { %1555 = vrot.lane.b32.xlu1 %v1554_v4, %s1680_s13 }
  0x53   :  { %v393_v11 = vld.sshfl [vmem:[#allocation1 + $0x10] sm:$0xff pattern:$0x75316420]  ;;  %v394_v12 = vld.sshfl [vmem:[#allocation1 + $0x18] sm:$0xff pattern:$0x75316420] }
  0x54   :  { %1530 = vrot.lane.b32.xlu2 %v1529_v2, %s1681_s14  ;;  %v1544_v13 = vpack.i.bf16 %v394_v12, %v393_v11 }
  0x55   :  { %1540 = vrot.lane.b32.xlu0 %v1539_v8, %s1682_s15 }
  0x58   :  { %63 = vrot.lane.b32.xlu1 %v1745_v9, %s1675_s0  ;;  %v69_v9 = vlaneseq }
  0x5a   :  { %v1819_v15 = vand.u32 127, %v69_v9 }
  0x5c   :  { %107 = vrot.lane.b32.xlu2 %v1754_v17, %s1676_s9  ;;  %vm71_vm0 = vcmp.lt.s32.totalorder %v1819_v15, 19  ;;  %vm113_vm1 = vcmp.lt.s32.totalorder %v1819_v15, 18  ;;  %vm164_vm2 = vcmp.lt.s32.totalorder %v1819_v15, 17  ;;  %vm206_vm3 = vcmp.lt.s32.totalorder %v1819_v15, 1 }
  0x5d   :  { %1545 = vrot.lane.b32.xlu0 %v1544_v13, %s1682_s15  ;;  %vm271_vm4 = vcmp.lt.s32.totalorder %v1819_v15, 127  ;;  %vm364_vm5 = vcmp.lt.s32.totalorder %v1819_v15, 110  ;;  %vm322_vm6 = vcmp.lt.s32.totalorder %v1819_v15, 111  ;;  %vm415_vm7 = vcmp.lt.s32.totalorder %v1819_v15, 109 }
  0x60   :  { %202 = vrot.lane.b32.xlu1 %v1772_v32, %s1678_s11 }
  0x64   :  { %158 = vrot.lane.b32.xlu2 %v1766_v27, %s1677_s10 }
  0x65   :  { %1550 = vrot.lane.b32.xlu0 %v1549_v3, %s1681_s14 }
  0x6b   :  { %v1817_v14 = vpop.permute.xlu2 %1465 }
  0x6c   :  { %65 = vrot.lane.b32.xlu2 %v1747_v10, %s1675_s0  ;;  %v1467_v16 = vunpack.i.l.bf16 %v1817_v14  ;;  %v1468_v27 = vunpack.i.h.bf16 %v1817_v14 }
  0x6d   :  { %200 = vrot.lane.b32.xlu0 %v1774_v35, %s1678_s11 }
  0x75   :  { %109 = vrot.lane.b32.xlu0 %v1757_v18, %s1676_s9 }
  0x7d   :  { %160 = vrot.lane.b32.xlu0 %v1764_v24, %s1677_s10 }
  0x80   :  { %v1461_v17 = vpop.permute.xlu1 %1460  ;;  %v1491_v25 = vpop.permute.xlu2 %1490 }
  0x81   :  { %v1463_v10 = vunpack.i.h.bf16 %v1461_v17  ;;  %v1462_v19 = vunpack.i.l.bf16 %v1461_v17  ;;  %v1493_v43 = vunpack.i.h.bf16 %v1491_v25  ;;  %v1492_v44 = vunpack.i.l.bf16 %v1491_v25 }
  0x83   :  { %v76_v20 = vsel %vm71_vm0, %v1462_v19, %v1463_v10  ;;  %v77_v18 = vsel %vm71_vm0, %v1467_v16, %v1462_v19  ;;  %v1852_v33 = vsel %vm71_vm0, %v1463_v10, %v1468_v27  ;;  %v211_v46 = vsel %vm206_vm3, %v1492_v44, %v1493_v43 }
  0x84   :  { %v78_v21 = vpack.c.bf16 %v76_v20, %v77_v18 }
  0x86   :  { %81 = vst [vmem:[#allocation2] sm:$0x33] %v78_v21 }
  0x88   :  { %v1829_v22 = vpop.permute.xlu0 %1470 }
  0x89   :  { %v1473_v23 = vunpack.i.h.bf16 %v1829_v22  ;;  %v1472_v24 = vunpack.i.l.bf16 %v1829_v22 }
  0x8b   :  { %v1834_v26 = vpop.permute.xlu1 %1475  ;;  %v118_v28 = vsel %vm113_vm1, %v1472_v24, %v1473_v23 }
  0x8c   :  { %v1477_v29 = vunpack.i.l.bf16 %v1834_v26  ;;  %v1478_v11 = vunpack.i.h.bf16 %v1834_v26 }
  0x8d   :  { %v1501_v37 = vpop.permute.xlu2 %1500 }
  0x8e   :  { %v119_v30 = vsel %vm113_vm1, %v1477_v29, %v1472_v24  ;;  %v1503_v55 = vunpack.i.h.bf16 %v1501_v37  ;;  %v1502_v56 = vunpack.i.l.bf16 %v1501_v37  ;;  %v117_v24 = vsel %vm113_vm1, %v1473_v23, %v1478_v11 }
  0x8f   :  { %v120_v31 = vpack.c.bf16 %v118_v28, %v119_v30 }
  0x90   :  { %v1846_v32 = vpop.permute.xlu0 %1480  ;;  %v272_v58 = vsel %vm271_vm4, %v1502_v56, %v1503_v55 }
  0x91   :  { %v126_v34 = vrot.slane %v120_v31, 6  ;;  %v1483_v35 = vunpack.i.h.bf16 %v1846_v32  ;;  %v1482_v36 = vunpack.i.l.bf16 %v1846_v32 }
  0x93   :  { %132 = vst [vmem:[#allocation2] sm:$0xcc] %v126_v34  ;;  %v169_v39 = vsel %vm164_vm2, %v1482_v36, %v1483_v35 }
  0x94   :  { %v1857_v38 = vpop.permute.xlu1 %1485 }
  0x95   :  { %v1487_v40 = vunpack.i.l.bf16 %v1857_v38 }
  0x97   :  { %v170_v41 = vsel %vm164_vm2, %v1487_v40, %v1482_v36 }
  0x98   :  { %v171_v42 = vpack.c.bf16 %v169_v39, %v170_v41  ;;  %v1488_v39 = vunpack.i.h.bf16 %v1857_v38 }
  0x9a   :  { %174 = vst [vmem:[#allocation2 + $0x18] sm:$0x33] %v171_v42 }
  0x9d   :  { %v1869_v45 = vpop.permute.xlu0 %1495 }
  0x9e   :  { %v1873_v47 = vpop.permute.xlu2 %1520  ;;  %v1498_v48 = vunpack.i.h.bf16 %v1869_v45  ;;  %v1497_v49 = vunpack.i.l.bf16 %v1869_v45 }
  0x9f   :  { %v1522_v34 = vunpack.i.l.bf16 %v1873_v47 }
  0xa0   :  { %v212_v50 = vsel %vm206_vm3, %v1497_v49, %v1492_v44  ;;  %v1885_v51 = vsel %vm206_vm3, %v1493_v43, %v1498_v48 }
  0xa1   :  { %v213_v52 = vpack.c.bf16 %v211_v46, %v212_v50  ;;  %v168_v50 = vsel %vm164_vm2, %v1483_v35, %v1488_v39 }
  0xa3   :  { %v219_v53 = vrot.slane %v213_v52, 6 }
  0xa5   :  { %225 = vst [vmem:[#allocation2 + $0x18] sm:$0xcc] %v219_v53 }
  0xa6   :  { %v1887_v54 = vpop.permute.xlu2 %1525 }
  0xa7   :  { %v1528_v59 = vunpack.i.h.bf16 %v1887_v54  ;;  %v1527_v60 = vunpack.i.l.bf16 %v1887_v54 }
  0xa9   :  { %v369_v1 = vsel %vm364_vm5, %v1527_v60, %v1528_v59 }
  0xaa   :  { %v1506_v57 = vpop.permute.xlu1 %1505 }
  0xab   :  { %v1507_v61 = vunpack.i.l.bf16 %v1506_v57  ;;  %v1508_v5 = vunpack.i.h.bf16 %v1506_v57 }
  0xad   :  { %v277_v62 = vsel %vm271_vm4, %v1503_v55, %v1507_v61  ;;  %v276_v12 = vsel %vm271_vm4, %v1507_v61, %v1508_v5  ;;  %v1523_v55 = vunpack.i.h.bf16 %v1873_v47 }
  0xae   :  { %v280_v63 = vpack.c.bf16 %v277_v62, %v272_v58  ;;  %v1897_v0 = vpop.permute.xlu2 %1530 }
  0xaf   :  { %v1532_v4 = vunpack.i.l.bf16 %v1897_v0 }
  0xb0   :  { %v286_v6 = vrot.slane %v280_v63, 6 }
  0xb1   :  { %v368_v7 = vsel %vm364_vm5, %v1528_v59, %v1532_v4  ;;  %v325_v59 = vsel %vm322_vm6, %v1522_v34, %v1523_v55 }
  0xb2   :  { %292 = vst [vmem:[#allocation2 + $0x40] sm:$0xcc] %v286_v6  ;;  %v371_v2 = vpack.c.bf16 %v368_v7, %v369_v1  ;;  %v1511_v8 = vpop.permute.xlu1 %1510 }
  0xb3   :  { %v1513_v13 = vunpack.i.h.bf16 %v1511_v8  ;;  %v1512_v3 = vunpack.i.l.bf16 %v1511_v8 }
  0xb4   :  { %v377_v9 = vrot.slane %v371_v2, 6 }
  0xb5   :  { %v273_v17 = vsel %vm271_vm4, %v1513_v13, %v1502_v56  ;;  %v274_v10 = vsel %vm271_vm4, %v1512_v3, %v1513_v13  ;;  %v275_v19 = vsel %vm271_vm4, %v1508_v5, %v1512_v3 }
  0xb6   :  { %383 = vst [vmem:[#allocation2 + $0x48] sm:$0xcc] %v377_v9  ;;  %v278_v20 = vpack.c.bf16 %v275_v19, %v276_v12  ;;  %v279_v18 = vpack.c.bf16 %v273_v17, %v274_v10  ;;  %v1917_v21 = vpop.permute.xlu2 %107 }
  0xb7   :  { %v116_v25 = vsel %vm113_vm1, %v1478_v11, %v1917_v21 }
  0xb8   :  { %v284_v28 = vrot.slane %v278_v20, 6  ;;  %v285_v30 = vrot.slane %v279_v18, 6  ;;  %v121_v31 = vpack.c.bf16 %v116_v25, %v117_v24 }
  0xba   :  { %290 = vst [vmem:[#allocation2 + $0x30] sm:$0xcc] %v284_v28  ;;  %v127_v36 = vrot.slane %v121_v31, 6  ;;  %v1516_v37 = vpop.permute.xlu1 %1515 }
  0xbb   :  { %291 = vst [vmem:[#allocation2 + $0x38] sm:$0xcc] %v285_v30  ;;  %v1518_v22 = vunpack.i.h.bf16 %v1516_v37  ;;  %v1517_v41 = vunpack.i.l.bf16 %v1516_v37  ;;  %v1533_v30 = vunpack.i.h.bf16 %v1897_v0 }
  0xbc   :  { %133 = vst [vmem:[#allocation2 + $0x8] sm:$0xcc] %v127_v36 }
  0xbd   :  { %v326_v23 = vsel %vm322_vm6, %v1518_v22, %v1522_v34  ;;  %v327_v42 = vsel %vm322_vm6, %v1517_v41, %v1518_v22  ;;  %v367_v37 = vsel %vm364_vm5, %v1532_v4, %v1533_v30 }
  0xbe   :  { %v329_v43 = vpack.c.bf16 %v326_v23, %v327_v42  ;;  %v1933_v44 = vpop.permute.xlu2 %158 }
  0xbf   :  { %v1536_v46 = vpop.permute.xlu0 %1535  ;;  %v167_v52 = vsel %vm164_vm2, %v1488_v39, %v1933_v44 }
  0xc0   :  { %332 = vst [vmem:[#allocation2 + $0x48] sm:$0x33] %v329_v43  ;;  %v172_v53 = vpack.c.bf16 %v167_v52, %v168_v50  ;;  %v1538_v62 = vunpack.i.h.bf16 %v1536_v46  ;;  %v1537_v63 = vunpack.i.l.bf16 %v1536_v46 }
  0xc2   :  { %175 = vst [vmem:[#allocation2 + $0x20] sm:$0x33] %v172_v53  ;;  %v1556_v56 = vpop.permute.xlu1 %1555  ;;  %v416_v2 = vsel %vm415_vm7, %v1537_v63, %v1538_v62 }
  0xc3   :  { %v1558_v57 = vunpack.i.h.bf16 %v1556_v56  ;;  %v1557_v58 = vunpack.i.l.bf16 %v1556_v56 }
  0xc5   :  { %v323_v32 = vsel %vm322_vm6, %v1557_v58, %v1558_v57  ;;  %v324_v35 = vsel %vm322_vm6, %v1523_v55, %v1557_v58  ;;  %v328_v61 = vsel %vm322_vm6, %v1558_v57, %v1517_v41 }
  0xc6   :  { %v330_v1 = vpack.c.bf16 %v324_v35, %v325_v59  ;;  %v331_v47 = vpack.c.bf16 %v328_v61, %v323_v32  ;;  %v66_v6 = vpop.permute.xlu2 %65 }
  0xc7   :  { %v1541_v5 = vpop.permute.xlu0 %1540  ;;  %v72_v12 = vsel %vm71_vm0, %v66_v6, %v1467_v16 }
  0xc8   :  { %333 = vst [vmem:[#allocation2 + $0x50] sm:$0x33] %v330_v1  ;;  %v1542_v7 = vunpack.i.l.bf16 %v1541_v5  ;;  %v1543_v19 = vunpack.i.h.bf16 %v1541_v5  ;;  %v1420_v1 = vld [vmem:[#allocation2 + $0x34] sm:$0xf] }
  0xc9   :  { %334 = vst [vmem:[#allocation2 + $0x58] sm:$0x33] %v331_v47 }
  0xca   :  { %v421_v8 = vsel %vm415_vm7, %v1538_v62, %v1542_v7  ;;  %v64_v11 = vpop.permute.xlu1 %63  ;;  %v420_v16 = vsel %vm415_vm7, %v1542_v7, %v1543_v19  ;;  %v1423_v7 = vld [vmem:[#allocation2 + $0x44] sm:$0xf0] }
  0xcb   :  { %v424_v13 = vpack.c.bf16 %v421_v8, %v416_v2  ;;  %v73_v3 = vsel %vm71_vm0, %v64_v11, %v66_v6  ;;  %v74_v9 = vsel %vm71_vm0, %v1468_v27, %v64_v11  ;;  %v1286_v2 = vld [vmem:[#allocation2 + $0x48] sm:$0xf0] }
  0xcc   :  { %v79_v17 = vpack.c.bf16 %v74_v9, %v1852_v33  ;;  %v80_v10 = vpack.c.bf16 %v72_v12, %v73_v3  ;;  %v1289_v9 = vor.u32 %v1420_v1, %v1286_v2 }
  0xcd   :  { %427 = vst [vmem:[#allocation2 + $0x70] sm:$0x33] %v424_v13 }
  0xce   :  { %82 = vst [vmem:[#allocation2 + $0x8] sm:$0x33] %v79_v17  ;;  %v1417_v17 = vld [vmem:[#allocation2 + $0x14] sm:$0xf0] }
  0xcf   :  { %83 = vst [vmem:[#allocation2 + $0x10] sm:$0x33] %v80_v10  ;;  %v1546_v20 = vpop.permute.xlu0 %1545  ;;  %v1414_v10 = vld [vmem:[#allocation2 + $0x4] sm:$0xf] }
  0xd0   :  { %v1548_v18 = vunpack.i.h.bf16 %v1546_v20  ;;  %v1547_v24 = vunpack.i.l.bf16 %v1546_v20  ;;  %v1292_v20 = vld [vmem:[#allocation2 + $0x38] sm:$0xf] }
  0xd2   :  { %v417_v25 = vsel %vm415_vm7, %v1548_v18, %v1537_v63  ;;  %v418_v14 = vsel %vm415_vm7, %v1547_v24, %v1548_v18  ;;  %v419_v27 = vsel %vm415_vm7, %v1543_v19, %v1547_v24  ;;  %v203_v43 = vpop.permute.xlu1 %202  ;;  %v1284_v63 = vld [vmem:[#allocation2 + $0x30] sm:$0xf]  ;;  %v1262_v19 = vld [vmem:[#allocation2 + $0x18] sm:$0xf0] }
  0xd3   :  { %v422_v33 = vpack.c.bf16 %v419_v27, %v420_v16  ;;  %v423_v28 = vpack.c.bf16 %v417_v25, %v418_v14  ;;  %v1285_v3 = vor.u32 %v1423_v7, %v1284_v63  ;;  %v1421_v18 = vld [vmem:[#allocation2 + $0x3c] sm:$0xf] }
  0xd4   :  { %v442_v59 = vld [vmem:[#allocation2 + $0x70] sm:$0x33] }
  0xd5   :  { %425 = vst [vmem:[#allocation2 + $0x60] sm:$0x33] %v422_v33  ;;  %v487_v11 = vunpack.c.h.b16 %v442_v59 }
  0xd6   :  { %426 = vst [vmem:[#allocation2 + $0x68] sm:$0x33] %v423_v28 }
  0xd7   :  { %v1551_v31 = vpop.permute.xlu0 %1550  ;;  %v505_v14 = vpack.c.b16 %v487_v11, %v487_v11 }
  0xd8   :  { %v1553_v34 = vunpack.i.h.bf16 %v1551_v31  ;;  %v1552_v36 = vunpack.i.l.bf16 %v1551_v31 }
  0xda   :  { %v370_v39 = vsel %vm364_vm5, %v1553_v34, %v1527_v60  ;;  %v365_v22 = vsel %vm364_vm5, %v1552_v36, %v1553_v34  ;;  %v366_v41 = vsel %vm364_vm5, %v1533_v30, %v1552_v36  ;;  %v207_v60 = vsel %vm206_vm3, %v203_v43, %v1497_v49 }
  0xdb   :  { %v372_v23 = vpack.c.bf16 %v366_v41, %v367_v37  ;;  %v373_v42 = vpack.c.bf16 %v370_v39, %v365_v22  ;;  %v1265_v36 = vor.u32 %v1414_v10, %v1262_v19  ;;  %v36_v39 = vld [vmem:[%s2353_s2] sm:$0xf]  ;;  %v539_v22 = vsel %vm522_vm8, %v505_v14, 0 }
  0xdc   :  { %v440_v46 = vld [vmem:[#allocation2 + $0x60] sm:$0x33] }
  0xdd   :  { %v378_v50 = vrot.slane %v372_v23, 6  ;;  %v379_v0 = vrot.slane %v373_v42, 6  ;;  %v482_v52 = vunpack.c.l.b16 %v440_v46  ;;  %v483_v53 = vunpack.c.h.b16 %v440_v46  ;;  %v441_v4 = vld [vmem:[#allocation2 + $0x68] sm:$0x33] }
  0xde   :  { %v484_v55 = vunpack.c.l.b16 %v441_v4  ;;  %v485_v54 = vunpack.c.h.b16 %v441_v4 }
  0xdf   :  { %384 = vst [vmem:[#allocation2 + $0x50] sm:$0xcc] %v378_v50  ;;  %v201_v56 = vpop.permute.xlu0 %200  ;;  %v500_v57 = vpack.c.b16 %v482_v52, %v482_v52  ;;  %v501_v58 = vpack.c.b16 %v483_v53, %v483_v53  ;;  %v1300_v52 = vld [vmem:[#allocation2 + $0x40] sm:$0xf]  ;;  %v1422_v53 = vld [vmem:[#allocation2 + $0x44] sm:$0xf] }
  0xe0   :  { %385 = vst [vmem:[#allocation2 + $0x58] sm:$0xcc] %v379_v0  ;;  %v208_v32 = vsel %vm206_vm3, %v201_v56, %v203_v43  ;;  %v209_v35 = vsel %vm206_vm3, %v1498_v48, %v201_v56  ;;  %v502_v61 = vpack.c.b16 %v484_v55, %v484_v55  ;;  %v503_v62 = vpack.c.b16 %v485_v54, %v485_v54  ;;  %v1415_v43 = vld [vmem:[#allocation2 + $0xc] sm:$0xf] }
  0xe1   :  { %v214_v49 = vpack.c.bf16 %v209_v35, %v1885_v51  ;;  %v215_v47 = vpack.c.bf16 %v207_v60, %v208_v32  ;;  %v524_v5 = vsel %vm522_vm8, %v500_v57, 0  ;;  %v527_v6 = vsel %vm522_vm8, %v501_v58, 0  ;;  %v1260_v51 = vld [vmem:[#allocation2] sm:$0xf] }
  0xe2   :  { %546 = vmatpush.bf16.msra.mxu0 %v524_v5  ;;  %559 = vmatpush.bf16.msra.mxu1 %v527_v6  ;;  %v530_v45 = vsel %vm522_vm8, %v502_v61, 0  ;;  %v533_v8 = vsel %vm522_vm8, %v503_v62, 0  ;;  %v486_v48 = vunpack.c.l.b16 %v442_v59  ;;  %v1261_v34 = vor.u32 %v1417_v17, %v1260_v51  ;;  %v30_v62 = vld [vmem:[%s2354_s1] sm:$0x3f] }
  0xe3   :  { %v220_v12 = vrot.slane %v214_v49, 6  ;;  %v221_v13 = vrot.slane %v215_v47, 6  ;;  %572 = vmatpush.bf16.msra.mxu2 %v530_v45  ;;  %585 = vmatpush.bf16.msra.mxu3 %v533_v8  ;;  %v2035_v63 = vperm.slane %v30_v62, 0  ;;  %v2037_v1 = vperm.slane %v30_v62, 1 }
  0xe4   :  { %v504_v25 = vpack.c.b16 %v486_v48, %v486_v48  ;;  %v2039_v5 = vperm.slane %v30_v62, 2  ;;  %v2049_v8 = vperm.slane %v30_v62, 3  ;;  %v2055_v10 = vperm.slane %v30_v62, 4 }
  0xe5   :  { %226 = vst [vmem:[#allocation2 + $0x20] sm:$0xcc] %v220_v12  ;;  %v2057_v19 = vperm.slane %v30_v62, 5 }
  0xe6   :  { %227 = vst [vmem:[#allocation2 + $0x28] sm:$0xcc] %v221_v13  ;;  %547 = vmatpush.bf16.msra.mxu0 %v1285_v3  ;;  %560 = vmatpush.bf16.msra.mxu1 %v1289_v9  ;;  %v1424_v24 = vld [vmem:[#allocation2 + $0x4c] sm:$0xf0]  ;;  %v1294_v16 = vld [vmem:[#allocation2 + $0x50] sm:$0xf0] }
  0xe7   :  { %v110_v27 = vpop.permute.xlu0 %109  ;;  %v1293_v33 = vor.u32 %v1424_v24, %v1292_v20  ;;  %v1297_v28 = vor.u32 %v1421_v18, %v1294_v16  ;;  %v536_v26 = vsel %vm522_vm8, %v504_v25, 0  ;;  %v1302_v23 = vld [vmem:[#allocation2 + $0x58] sm:$0xf0] }
  0xe8   :  { %v114_v30 = vsel %vm113_vm1, %v110_v27, %v1477_v29  ;;  %v115_v31 = vsel %vm113_vm1, %v1917_v21, %v110_v27  ;;  %v1268_v29 = vld [vmem:[#allocation2 + $0x8] sm:$0xf]  ;;  %v1425_v21 = vld [vmem:[#allocation2 + $0x54] sm:$0xf0]  ;;  %v1305_v55 = vor.u32 %v1422_v53, %v1302_v23 }
  0xe9   :  { %v122_v37 = vpack.c.bf16 %v114_v30, %v115_v31  ;;  %573 = vmatpush.bf16.msra.mxu2 %v1293_v33  ;;  %586 = vmatpush.bf16.msra.mxu3 %v1297_v28  ;;  %v1301_v4 = vor.u32 %v1425_v21, %v1300_v52 }
  0xea   :  { %548 = vmatpush.bf16.msra.mxu0 %v1261_v34  ;;  %561 = vmatpush.bf16.msra.mxu1 %v1265_v36 }
  0xeb   :  { %v128_v41 = vrot.slane %v122_v37, 6 }
  0xec   :  { %v1418_v42 = vld [vmem:[#allocation2 + $0x1c] sm:$0xf0]  ;;  %v1270_v46 = vld [vmem:[#allocation2 + $0x20] sm:$0xf0] }
  0xed   :  { %134 = vst [vmem:[#allocation2 + $0x10] sm:$0xcc] %v128_v41  ;;  %1306 = vmatmul.msk.bf16.vlgmr.msra.gmra.mxu0 %vm518_vm9, %v36_v39  ;;  %1307 = vmatmul.msk.bf16.vlgmr.msra.gmra.mxu1 %vm518_vm9, %v36_v39  ;;  %v1269_v50 = vor.u32 %v1418_v42, %v1268_v29  ;;  %v1273_v0 = vor.u32 %v1415_v43, %v1270_v46  ;;  %v1683_v41 = vmov 0  }
  0xee   :  { %598 = vmatpush.bf16.msrb.mxu0 %v536_v26  ;;  %611 = vmatpush.bf16.msrb.mxu1 %v539_v22 }
  0xef   :  { %v161_v54 = vpop.permute.xlu0 %160  ;;  %574 = vmatpush.bf16.msra.mxu2 %v1269_v50  ;;  %587 = vmatpush.bf16.msra.mxu3 %v1273_v0 }
  0xf0   :  { %v165_v60 = vsel %vm164_vm2, %v161_v54, %v1487_v40  ;;  %v166_v56 = vsel %vm164_vm2, %v1933_v44, %v161_v54  ;;  %1559 = vset.pattern.permute.xlu0 %v1683_v41  ;;  %1670 = vset.pattern.permute.xlu2 %v1683_v41 }
  0xf1   :  { %v173_v57 = vpack.c.bf16 %v165_v60, %v166_v56  ;;  %v619_v60 = vld [vmem:[%s2355_s3] sm:$0xff] }
  0xf2   :  { %599 = vmatpush.bf16.msrb.mxu0 %v1301_v4  ;;  %612 = vmatpush.bf16.msrb.mxu1 %v1305_v55 }
  0xf3   :  { %1308 = vmatmul.msk.bf16.vlgmr.msra.gmra.mxu2 %vm518_vm9, %v36_v39  ;;  %1309 = vmatmul.msk.bf16.vlgmr.msra.gmra.mxu3 %vm518_vm9, %v36_v39  ;;  %176 = vst [vmem:[#allocation2 + $0x28] sm:$0x33] %v173_v57 }
  0xf4   :  { %v1276_v58 = vld [vmem:[#allocation2 + $0x10] sm:$0xf]  ;;  %v1416_v32 = vld [vmem:[#allocation2 + $0x14] sm:$0xf] }
  0xfa   :  { %v1419_v59 = vld [vmem:[#allocation2 + $0x24] sm:$0xf0]  ;;  %v1278_v35 = vld [vmem:[#allocation2 + $0x28] sm:$0xf0] }
  0xfb   :  { %v1277_v38 = vor.u32 %v1419_v59, %v1276_v58  ;;  %v1281_v61 = vor.u32 %v1416_v32, %v1278_v35  ;;  %v620_v32 = vld [vmem:[%s2356_s4] sm:$0xff] }
  0xfd   :  { %600 = vmatpush.bf16.msrb.mxu0 %v1277_v38  ;;  %613 = vmatpush.bf16.msrb.mxu1 %v1281_v61 }
 0x100   :  { %1310 = vmatmul.msk.bf16.vlgmr.msrb.gmra.mxu0 %vm518_vm9, %v36_v39  ;;  %1311 = vmatmul.msk.bf16.vlgmr.msrb.gmra.mxu1 %vm518_vm9, %v36_v39 }
 0x16a   :  { %v2028_v40 = vpop.f32.mrf.mxu0  ;;  %v2030_v44 = vpop.f32.mrf.mxu1 }
 0x16b   :  { %v634_v6 = vmul.f32 %v2035_v63, %v2028_v40  ;;  %v635_v7 = vmul.f32 %v2037_v1, %v2030_v44 }
 0x16d   :  { %v648_v11 = vmul.f32 %v634_v6, %v634_v6  ;;  %v649_v12 = vmul.f32 %v635_v7, %v635_v7  ;;  %v640_v13 = vadd.f32 %v635_v7, %v634_v6 }
 0x16f   :  { %v654_v9 = vadd.f32 %v649_v12, %v648_v11 }
 0x172   :  { %v552_v49 = vpop.f32.mrf.mxu0  ;;  %v565_v47 = vpop.f32.mrf.mxu1 }
 0x176   :  { %v2045_v2 = vpop.f32.mrf.mxu2  ;;  %v2047_v45 = vpop.f32.mrf.mxu3 }
 0x177   :  { %v636_v48 = vmul.f32 %v2039_v5, %v2045_v2  ;;  %v637_v3 = vmul.f32 %v2049_v8, %v2047_v45 }
 0x179   :  { %v650_v51 = vmul.f32 %v636_v48, %v636_v48  ;;  %v641_v17 = vadd.f32 %v640_v13, %v636_v48  ;;  %v651_v18 = vmul.f32 %v637_v3, %v637_v3 }
 0x17b   :  { %v655_v20 = vadd.f32 %v654_v9, %v650_v51  ;;  %v642_v27 = vadd.f32 %v641_v17, %v637_v3 }
 0x17d   :  { %v602_v25 = vpop.f32.mrf.mxu0  ;;  %v615_v14 = vpop.f32.mrf.mxu1  ;;  %v656_v36 = vadd.f32 %v655_v20, %v651_v18 }
 0x17e   :  { %v578_v24 = vpop.f32.mrf.mxu2  ;;  %v591_v16 = vpop.f32.mrf.mxu3  ;;  %v638_v33 = vmul.f32 %v2055_v10, %v602_v25  ;;  %v639_v28 = vmul.f32 %v2057_v19, %v615_v14 }
 0x180   :  { %v652_v30 = vmul.f32 %v638_v33, %v638_v33  ;;  %v643_v31 = vadd.f32 %v642_v27, %v638_v33  ;;  %v653_v34 = vmul.f32 %v639_v28, %v639_v28 }
 0x182   :  { %v644_v37 = vadd.f32 %v643_v31, %v639_v28  ;;  %v657_v39 = vadd.f32 %v656_v36, %v652_v30 }
 0x184   :  { %645 = vadd.xlane.f32.xlu1 %v644_v37  ;;  %v658_v26 = vadd.f32 %v657_v39, %v653_v34 }
 0x185   :  { %v604_v22 = vpop.f32.mrf.mxu0  ;;  %v617_v29 = vpop.f32.mrf.mxu1 }
 0x186   :  { %659 = vadd.xlane.f32.xlu2 %v658_v26 }
 0x1f7   :  { %v646_v21 = vpop.xlane.xlu1 %645 }
 0x1f8   :  { %v647_v23 = vmul.f32 0.001953125, %v646_v21 }
 0x1f9   :  { %v660_v42 = vpop.xlane.xlu2 %659 }
 0x1fa   :  { %v662_v43 = vmul.f32 %v647_v23, %v647_v23  ;;  %v661_v46 = vmul.f32 0.001953125, %v660_v42 }
 0x1fc   :  { %v663_v50 = vsub.f32 %v661_v46, %v662_v43 }
 0x1fe   :  { %v664_v0 = vadd.f32 1e-05, %v663_v50 }
 0x200   :  { %1671 = vrsqrt.f32 %v664_v0  ;;  %vm671_vm11 = vweird.f32 %v664_v0 }
 0x206   :  { %v1672_v52 = vpop.eup %1671 }
 0x207   :  { %v666_v53 = vmul.f32 %v1672_v52, %v664_v0  ;;  %vm672_vm10 = vweird.f32 %v1672_v52 }
 0x208   :  { %vm673_vm12 = vmor %vm671_vm11, %vm672_vm10 }
 0x209   :  { %v667_v4 = vmul.f32 %v1672_v52, %v666_v53 }
 0x20b   :  { %v668_v55 = vmul.f32 0.5, %v667_v4 }
 0x20d   :  { %v669_v54 = vsub.f32 1.5, %v668_v55 }
 0x20f   :  { %v670_v56 = vmul.f32 %v1672_v52, %v669_v54 }
 0x211   :  { %v674_v57 = vsel %vm673_vm12, %v1672_v52, %v670_v56 }
 0x212   :  { %v675_v58 = vmul.f32 %v674_v57, %v619_v60 }
 0x214   :  { %680 = vperm.xlu0 %1559, %v675_v58   ;;  %v676_v59 = vmul.f32 %v675_v58, %v647_v23 }
 0x216   :  { %v677_v35 = vsub.f32 %v620_v32, %v676_v59 }
 0x21c   :  { %691 = vperm.xlu0 %1559, %v677_v35  }
 0x286   :  { %v681_v38 = vpop.permute.xlu0 %680 }
 0x287   :  { %v683_v61 = vmul.f32 %v681_v38, %v2028_v40  ;;  %v684_v62 = vmul.f32 %v681_v38, %v2030_v44  ;;  %v685_v49 = vmul.f32 %v681_v38, %v2045_v2  ;;  %v686_v47 = vmul.f32 %v681_v38, %v2047_v45 }
 0x288   :  { %v687_v6 = vmul.f32 %v681_v38, %v602_v25  ;;  %v688_v7 = vmul.f32 %v681_v38, %v615_v14 }
 0x28e   :  { %v692_v48 = vpop.permute.xlu0 %691 }
 0x28f   :  { %v694_v11 = vadd.f32 %v692_v48, %v683_v61  ;;  %v695_v12 = vadd.f32 %v692_v48, %v684_v62  ;;  %v696_v13 = vadd.f32 %v692_v48, %v685_v49  ;;  %v697_v51 = vadd.f32 %v692_v48, %v686_v47 }
 0x290   :  { %v698_v3 = vadd.f32 %v692_v48, %v687_v6  ;;  %v699_v9 = vadd.f32 %v692_v48, %v688_v7 }
 0x291   :  { %v700_v17 = vmax.f32 %v694_v11, 0.0  ;;  %v701_v20 = vmax.f32 %v695_v12, 0.0  ;;  %v702_v18 = vmax.f32 %v696_v13, 0.0  ;;  %v703_v24 = vmax.f32 %v697_v51, 0.0 }
 0x292   :  { %v704_v40 = vmax.f32 %v698_v3, 0.0  ;;  %v705_v16 = vmax.f32 %v699_v9, 0.0 }
 0x293   :  { %v706_v44 = vmul.f32 %v700_v17, %v2035_v63  ;;  %v707_v2 = vmul.f32 %v701_v20, %v2037_v1  ;;  %v708_v45 = vmul.f32 %v702_v18, %v2039_v5  ;;  %v709_v33 = vmul.f32 %v703_v24, %v2049_v8 }
 0x294   :  { %v710_v25 = vmul.f32 %v704_v40, %v2055_v10  ;;  %v711_v28 = vmul.f32 %v705_v16, %v2057_v19 }
 0x295   :  { %v1570_v14 = vpack.i.bf16 %v707_v2, %v706_v44  ;;  %v809_v30 = vpack.c.bf16 %v707_v2, %v706_v44  ;;  %v810_v31 = vpack.c.bf16 %v709_v33, %v708_v45 }
 0x296   :  { %v1575_v27 = vpack.i.bf16 %v710_v25, %v708_v45  ;;  %v811_v34 = vpack.c.bf16 %v711_v28, %v710_v25  ;;  %v1615_v36 = vpack.i.bf16 %v709_v33, %v711_v28  ;;  %v1650_v37 = vpack.i.bf16 %v708_v45, %v710_v25 }
 0x297   :  { %1571 = vrot.lane.b32.xlu2 %v1570_v14, %s1680_s13  ;;  %1561 = vrot.lane.b32.xlu0 %v1570_v14, %s1682_s15  ;;  %812 = vst [vmem:[#allocation3 + $0x60] sm:$0xff] %v809_v30  ;;  %v1660_v39 = vpack.i.bf16 %v710_v25, %v709_v33 }
 0x298   :  { %1576 = vrot.lane.b32.xlu1 %v1575_v27, %s1680_s13  ;;  %813 = vst [vmem:[#allocation3 + $0x68] sm:$0xff] %v810_v31 }
 0x299   :  { %814 = vst [vmem:[#allocation3 + $0x70] sm:$0xff] %v811_v34 }
 0x29f   :  { %1596 = vrot.lane.b32.xlu2 %v1575_v27, %s1679_s12  ;;  %1566 = vrot.lane.b32.xlu0 %v1575_v27, %s1682_s15 }
 0x2a0   :  { %1601 = vrot.lane.b32.xlu1 %v1570_v14, %s1677_s10 }
 0x2a7   :  { %1611 = vrot.lane.b32.xlu2 %v1570_v14, %s1678_s11  ;;  %1581 = vrot.lane.b32.xlu0 %v1570_v14, %s1681_s14 }
 0x2a8   :  { %1616 = vrot.lane.b32.xlu1 %v1615_v36, %s1678_s11 }
 0x2af   :  { %1626 = vrot.lane.b32.xlu2 %v1570_v14, %s1675_s0  ;;  %1586 = vrot.lane.b32.xlu0 %v1575_v27, %s1681_s14 }
 0x2b0   :  { %723 = vrot.lane.b32.xlu1 %v711_v28, %s1675_s0 }
 0x2b7   :  { %747 = vrot.lane.b32.xlu2 %v711_v28, %s1676_s9  ;;  %1591 = vrot.lane.b32.xlu0 %v1570_v14, %s1679_s12 }
 0x2b8   :  { %1636 = vrot.lane.b32.xlu1 %v1615_v36, %s1680_s13 }
 0x2bf   :  { %1646 = vrot.lane.b32.xlu2 %v1615_v36, %s1679_s12  ;;  %1606 = vrot.lane.b32.xlu0 %v1615_v36, %s1677_s10 }
 0x2c0   :  { %1651 = vrot.lane.b32.xlu1 %v1650_v37, %s1677_s10 }
 0x2c7   :  { %1661 = vrot.lane.b32.xlu2 %v1660_v39, %s1675_s0  ;;  %1621 = vrot.lane.b32.xlu0 %v1615_v36, %s1682_s15 }
 0x2c8   :  { %1666 = vrot.lane.b32.xlu1 %v1660_v39, %s1676_s9 }
 0x2cf   :  { %741 = vrot.lane.b32.xlu2 %v708_v45, %s1676_s9  ;;  %1631 = vrot.lane.b32.xlu0 %v1570_v14, %s1676_s9 }
 0x2d7   :  { %1641 = vrot.lane.b32.xlu0 %v1615_v36, %s1681_s14 }
 0x2df   :  { %1656 = vrot.lane.b32.xlu0 %v1650_v37, %s1678_s11 }
 0x2e7   :  { %717 = vrot.lane.b32.xlu0 %v708_v45, %s1675_s0 }
 0x2f1   :  { %v2103_v26 = vpop.permute.xlu2 %1571 }
 0x2f2   :  { %v1574_v41 = vunpack.i.h.bf16 %v2103_v26  ;;  %v1573_v21 = vunpack.i.l.bf16 %v2103_v26 }
 0x2f4   :  { %v855_v50 = vsel %vm322_vm6, %v1573_v21, %v1574_v41 }
 0x2f9   :  { %v2105_v22 = vpop.permute.xlu2 %1596 }
 0x2fa   :  { %v1599_v7 = vunpack.i.h.bf16 %v2105_v22  ;;  %v1598_v48 = vunpack.i.l.bf16 %v2105_v22 }
 0x301   :  { %v2107_v29 = vpop.permute.xlu2 %1611 }
 0x302   :  { %v1614_v38 = vunpack.i.h.bf16 %v2107_v29  ;;  %v1613_v61 = vunpack.i.l.bf16 %v2107_v29 }
 0x304   :  { %v801_v20 = vsel %vm206_vm3, %v1613_v61, %v1614_v38 }
 0x309   :  { %v2111_v23 = vpop.permute.xlu2 %1626  ;;  %v2113_v42 = vpop.permute.xlu0 %1561 }
 0x30a   :  { %v2115_v43 = vpop.permute.xlu1 %1576  ;;  %v1564_v53 = vunpack.i.h.bf16 %v2113_v42  ;;  %v1563_v4 = vunpack.i.l.bf16 %v2113_v42  ;;  %v1629_v16 = vunpack.i.h.bf16 %v2111_v23  ;;  %v1628_v44 = vunpack.i.l.bf16 %v2111_v23 }
 0x30b   :  { %v1578_v46 = vunpack.i.l.bf16 %v2115_v43 }
 0x30c   :  { %v903_v57 = vsel %vm415_vm7, %v1563_v4, %v1564_v53  ;;  %v729_v34 = vsel %vm71_vm0, %v1628_v44, %v1629_v16 }
 0x30d   :  { %v854_v0 = vsel %vm322_vm6, %v1574_v41, %v1578_v46 }
 0x30e   :  { %v857_v52 = vpack.c.bf16 %v854_v0, %v855_v50 }
 0x310   :  { %860 = vst [vmem:[#allocation3 + $0x90] sm:$0xff] %v857_v52 }
 0x311   :  { %v2128_v55 = vpop.permute.xlu2 %747  ;;  %v2130_v54 = vpop.permute.xlu0 %1566 }
 0x312   :  { %v2132_v60 = vpop.permute.xlu1 %1601  ;;  %v1568_v56 = vunpack.i.l.bf16 %v2130_v54 }
 0x314   :  { %v902_v58 = vsel %vm415_vm7, %v1564_v53, %v1568_v56 }
 0x315   :  { %v905_v59 = vpack.c.bf16 %v902_v58, %v903_v57 }
 0x317   :  { %v1013_v32 = vunpack.c.l.b16 %v905_v59  ;;  %v1014_v35 = vunpack.c.h.b16 %v905_v59 }
 0x319   :  { %v1647_v62 = vpop.permute.xlu2 %1646  ;;  %v2145_v49 = vpop.permute.xlu0 %1581  ;;  %v1043_v47 = vpack.c.b16 %v1013_v32, %v1013_v32  ;;  %v1044_v6 = vpack.c.b16 %v1014_v35, %v1014_v35  ;;  %v1579_v32 = vunpack.i.h.bf16 %v2115_v43 }
 0x31a   :  { %v2149_v11 = vpop.permute.xlu1 %1616  ;;  %v1649_v12 = vunpack.i.h.bf16 %v1647_v62  ;;  %v1584_v2 = vunpack.i.h.bf16 %v2145_v49  ;;  %v1583_v45 = vunpack.i.l.bf16 %v2145_v49  ;;  %v1648_v53 = vunpack.i.l.bf16 %v1647_v62 }
 0x31b   :  { %v1618_v13 = vunpack.i.l.bf16 %v2149_v11  ;;  %v1079_v51 = vsel %vm1077_vm13, %v1043_v47, 0  ;;  %v1082_v3 = vsel %vm1077_vm13, %v1044_v6, 0 }
 0x31c   :  { %v828_v9 = vsel %vm271_vm4, %v1649_v12, %v1599_v7  ;;  %v829_v17 = vsel %vm271_vm4, %v1598_v48, %v1649_v12  ;;  %1099 = vmatpush.bf16.msrb.mxu2 %v1079_v51  ;;  %1112 = vmatpush.bf16.msrb.mxu3 %v1082_v3  ;;  %v879_v31 = vsel %vm364_vm5, %v1583_v45, %v1584_v2 }
 0x31d   :  { %v802_v18 = vsel %vm206_vm3, %v1618_v13, %v1613_v61  ;;  %v834_v24 = vpack.c.bf16 %v828_v9, %v829_v17  ;;  %v827_v9 = vsel %vm271_vm4, %v1599_v7, %v1648_v53 }
 0x31e   :  { %v803_v40 = vpack.c.bf16 %v801_v20, %v802_v18 }
 0x31f   :  { %837 = vst [vmem:[#allocation3 + $0x80] sm:$0xff] %v834_v24  ;;  %v1386_v24 = vld [vmem:[#allocation3 + $0x90] sm:$0xf] }
 0x320   :  { %806 = vst [vmem:[#allocation3 + $0x48] sm:$0xff] %v803_v40 }
 0x321   :  { %v2170_v25 = vpop.permute.xlu2 %1661  ;;  %v2172_v14 = vpop.permute.xlu0 %1586 }
 0x322   :  { %v724_v27 = vpop.permute.xlu1 %723  ;;  %v1664_v33 = vunpack.i.h.bf16 %v2170_v25  ;;  %v1663_v28 = vunpack.i.l.bf16 %v2170_v25  ;;  %v1588_v30 = vunpack.i.l.bf16 %v2172_v14 }
 0x323   :  { %v730_v36 = vsel %vm71_vm0, %v724_v27, %v1628_v44  ;;  %v1444_v44 = vld [vmem:[#allocation3 + $0x94] sm:$0xf] }
 0x324   :  { %v731_v37 = vpack.c.bf16 %v729_v34, %v730_v36  ;;  %v725_v39 = vsel %vm71_vm0, %v1664_v33, %v724_v27  ;;  %v726_v22 = vsel %vm71_vm0, %v1663_v28, %v1664_v33  ;;  %v878_v41 = vsel %vm364_vm5, %v1584_v2, %v1588_v30 }
 0x325   :  { %v733_v50 = vpack.c.bf16 %v725_v39, %v726_v22  ;;  %v881_v0 = vpack.c.bf16 %v878_v41, %v879_v31  ;;  %v1603_v27 = vunpack.i.l.bf16 %v2132_v60 }
 0x326   :  { %734 = vst [vmem:[#allocation3] sm:$0xff] %v731_v37 }
 0x327   :  { %736 = vst [vmem:[#allocation3 + $0x10] sm:$0xff] %v733_v50 }
 0x328   :  { %884 = vst [vmem:[#allocation3 + $0xa8] sm:$0xff] %v881_v0 }
 0x329   :  { %v1592_v52 = vpop.permute.xlu0 %1591 }
 0x32a   :  { %v1637_v57 = vpop.permute.xlu1 %1636  ;;  %v1594_v58 = vunpack.i.h.bf16 %v1592_v52  ;;  %v1593_v59 = vunpack.i.l.bf16 %v1592_v52 }
 0x32b   :  { %v1639_v35 = vunpack.i.h.bf16 %v1637_v57  ;;  %v1638_v61 = vunpack.i.l.bf16 %v1637_v57 }
 0x32c   :  { %v830_v47 = vsel %vm271_vm4, %v1594_v58, %v1598_v48  ;;  %v831_v6 = vsel %vm271_vm4, %v1593_v59, %v1594_v58  ;;  %v832_v12 = vsel %vm271_vm4, %v1648_v53, %v1593_v59  ;;  %v1362_v58 = vld [vmem:[#allocation3 + $0x60] sm:$0xf]  ;;  %v1438_v59 = vld [vmem:[#allocation3 + $0x64] sm:$0xf] }
 0x32d   :  { %v852_v51 = vsel %vm322_vm6, %v1639_v35, %v1579_v32  ;;  %v853_v62 = vsel %vm322_vm6, %v1578_v46, %v1639_v35  ;;  %v851_v3 = vsel %vm322_vm6, %v1579_v32, %v1638_v61  ;;  %v856_v48 = vsel %vm322_vm6, %v1638_v61, %v1573_v21 }
 0x32e   :  { %v858_v17 = vpack.c.bf16 %v852_v51, %v853_v62  ;;  %v859_v20 = vpack.c.bf16 %v856_v48, %v851_v3  ;;  %v833_v18 = vpack.c.bf16 %v830_v47, %v831_v6  ;;  %v835_v40 = vpack.c.bf16 %v832_v12, %v827_v9 }
 0x32f   :  { %v1447_v43 = vld [vmem:[#allocation3 + $0xa4] sm:$0xf0]  ;;  %v1388_v2 = vld [vmem:[#allocation3 + $0xa8] sm:$0xf0]  ;;  %v1604_v46 = vunpack.i.h.bf16 %v2132_v60  ;;  %v1569_v32 = vunpack.i.h.bf16 %v2130_v54 }
 0x330   :  { %861 = vst [vmem:[#allocation3 + $0x98] sm:$0xff] %v858_v17  ;;  %v1387_v26 = vor.u32 %v1447_v43, %v1386_v24  ;;  %v1391_v33 = vor.u32 %v1444_v44, %v1388_v2 }
 0x331   :  { %862 = vst [vmem:[#allocation3 + $0xa0] sm:$0xff] %v859_v20  ;;  %v1607_v21 = vpop.permute.xlu0 %1606  ;;  %v777_v39 = vsel %vm164_vm2, %v1603_v27, %v1604_v46 }
 0x332   :  { %836 = vst [vmem:[#allocation3 + $0x78] sm:$0xff] %v833_v18  ;;  %v1652_v31 = vpop.permute.xlu1 %1651  ;;  %v1609_v7 = vunpack.i.h.bf16 %v1607_v21  ;;  %v1608_v34 = vunpack.i.l.bf16 %v1607_v21  ;;  %1100 = vmatpush.bf16.msrb.mxu2 %v1387_v26  ;;  %1113 = vmatpush.bf16.msrb.mxu3 %v1391_v33 }
 0x333   :  { %838 = vst [vmem:[#allocation3 + $0x88] sm:$0xff] %v835_v40  ;;  %v1654_v36 = vunpack.i.h.bf16 %v1652_v31  ;;  %v1653_v37 = vunpack.i.l.bf16 %v1652_v31 }
 0x334   :  { %v778_v60 = vsel %vm164_vm2, %v1608_v34, %v1603_v27  ;;  %v1340_v27 = vld [vmem:[#allocation3 + $0x48] sm:$0xf0] }
 0x335   :  { %v776_v22 = vsel %vm164_vm2, %v1604_v46, %v1654_v36  ;;  %v774_v41 = vsel %vm164_vm2, %v1609_v7, %v1653_v37  ;;  %v775_v50 = vsel %vm164_vm2, %v1654_v36, %v1609_v7  ;;  %v773_v0 = vsel %vm164_vm2, %v1653_v37, %v1608_v34  ;;  %v1435_v46 = vld [vmem:[#allocation3 + $0x44] sm:$0xf0]  ;;  %v742_v36 = vpop.permute.xlu2 %741 }
 0x336   :  { %v780_v52 = vpack.c.bf16 %v775_v50, %v776_v22  ;;  %v779_v53 = vpack.c.bf16 %v777_v39, %v778_v60  ;;  %v781_v57 = vpack.c.bf16 %v773_v0, %v774_v41 }
 0x337   :  { %v1394_v29 = vld [vmem:[#allocation3 + $0x98] sm:$0xf] }
 0x338   :  { %783 = vst [vmem:[#allocation3 + $0x38] sm:$0xff] %v780_v52 }
 0x339   :  { %782 = vst [vmem:[#allocation3 + $0x30] sm:$0xff] %v779_v53  ;;  %v1622_v35 = vpop.permute.xlu0 %1621  ;;  %v1441_v61 = vld [vmem:[#allocation3 + $0x74] sm:$0xf0]  ;;  %v1364_v47 = vld [vmem:[#allocation3 + $0x78] sm:$0xf0] }
 0x33a   :  { %784 = vst [vmem:[#allocation3 + $0x40] sm:$0xff] %v781_v57  ;;  %v1667_v6 = vpop.permute.xlu1 %1666  ;;  %v1624_v12 = vunpack.i.h.bf16 %v1622_v35  ;;  %v1623_v51 = vunpack.i.l.bf16 %v1622_v35  ;;  %v1363_v62 = vor.u32 %v1441_v61, %v1362_v58  ;;  %v1367_v3 = vor.u32 %v1438_v59, %v1364_v47 }
 0x33b   :  { %v1669_v48 = vunpack.i.h.bf16 %v1667_v6  ;;  %v1668_v9 = vunpack.i.l.bf16 %v1667_v6  ;;  %v1589_v58 = vunpack.i.h.bf16 %v2172_v14 }
 0x33c   :  { %v899_v17 = vsel %vm415_vm7, %v1569_v32, %v1623_v51  ;;  %v900_v20 = vsel %vm415_vm7, %v1624_v12, %v1569_v32  ;;  %v901_v18 = vsel %vm415_vm7, %v1568_v56, %v1624_v12  ;;  %v904_v24 = vsel %vm415_vm7, %v1623_v51, %v1563_v4  ;;  %1101 = vmatpush.bf16.msrb.mxu2 %v1363_v62 }
 0x33d   :  { %v749_v40 = vsel %vm113_vm1, %v1669_v48, %v2128_v55  ;;  %v750_v43 = vsel %vm113_vm1, %v1668_v9, %v1669_v48  ;;  %v906_v44 = vpack.c.bf16 %v900_v20, %v901_v18  ;;  %1114 = vmatpush.bf16.msrb.mxu3 %v1367_v3  ;;  %v907_v54 = vpack.c.bf16 %v904_v24, %v899_v17  ;;  %v1314_v48 = vld [vmem:[#allocation3] sm:$0xf] }
 0x33e   :  { %v757_v2 = vpack.c.bf16 %v749_v40, %v750_v43  ;;  %v751_v60 = vsel %vm113_vm1, %v742_v36, %v1668_v9  ;;  %v1426_v9 = vld [vmem:[#allocation3 + $0x4] sm:$0xf]  ;;  %v1619_v43 = vunpack.i.h.bf16 %v2149_v11 }
 0x33f   :  { %v1015_v56 = vunpack.c.l.b16 %v906_v44  ;;  %v1016_v26 = vunpack.c.h.b16 %v906_v44  ;;  %v1017_v61 = vunpack.c.l.b16 %v907_v54  ;;  %v1018_v47 = vunpack.c.h.b16 %v907_v54  ;;  %v2280_v54 = vld [vmem:[%s2357_s5] sm:$0xf]  ;;  %v1446_v11 = vld [vmem:[#allocation3 + $0xa4] sm:$0xf]  ;;  %v1346_v25 = vld [vmem:[#allocation3 + $0x38] sm:$0xf] }
 0x340   :  { %760 = vst [vmem:[#allocation3 + $0x28] sm:$0xff] %v757_v2  ;;  %v1338_v42 = vld [vmem:[#allocation3 + $0x30] sm:$0xf]  ;;  %v1432_v33 = vld [vmem:[#allocation3 + $0x34] sm:$0xf] }
 0x341   :  { %v1632_v4 = vpop.permute.xlu0 %1631  ;;  %v1339_v21 = vor.u32 %v1435_v46, %v1338_v42  ;;  %v1343_v31 = vor.u32 %v1432_v33, %v1340_v27  ;;  %v1045_v7 = vpack.c.b16 %v1015_v56, %v1015_v56  ;;  %v1046_v34 = vpack.c.b16 %v1016_v26, %v1016_v26 }
 0x342   :  { %v1634_v37 = vunpack.i.h.bf16 %v1632_v4  ;;  %v1633_v39 = vunpack.i.l.bf16 %v1632_v4  ;;  %v1047_v17 = vpack.c.b16 %v1017_v61, %v1017_v61  ;;  %v1048_v20 = vpack.c.b16 %v1018_v47, %v1018_v47  ;;  %v1445_v4 = vld [vmem:[#allocation3 + $0x9c] sm:$0xf]  ;;  %v1378_v61 = vld [vmem:[#allocation3 + $0x70] sm:$0xf]  ;;  %v1440_v47 = vld [vmem:[#allocation3 + $0x74] sm:$0xf] }
 0x343   :  { %1102 = vmatpush.bf16.msrb.mxu2 %v1339_v21  ;;  %1115 = vmatpush.bf16.msrb.mxu3 %v1343_v31  ;;  %v1085_v22 = vsel %vm1077_vm13, %v1045_v7, 0  ;;  %v1088_v41 = vsel %vm1077_vm13, %v1046_v34, 0  ;;  %v1402_v21 = vld [vmem:[#allocation3 + $0xa0] sm:$0xf] }
 0x344   :  { %v752_v50 = vsel %vm113_vm1, %v1634_v37, %v742_v36  ;;  %v753_v0 = vsel %vm113_vm1, %v1633_v39, %v1634_v37  ;;  %v754_v52 = vsel %vm113_vm1, %v2128_v55, %v1633_v39  ;;  %1125 = vmatpush.bf16.msra.mxu0 %v1085_v22  ;;  %1138 = vmatpush.bf16.msra.mxu1 %v1088_v41  ;;  %v1094_v2 = vsel %vm1077_vm13, %v1048_v20, 0  ;;  %v1372_v22 = vld [vmem:[#allocation3 + $0x80] sm:$0xf0] }
 0x345   :  { %v756_v53 = vpack.c.bf16 %v751_v60, %v752_v50  ;;  %v755_v57 = vpack.c.bf16 %v753_v0, %v754_v52  ;;  %v1442_v60 = vld [vmem:[#allocation3 + $0x7c] sm:$0xf0]  ;;  %v1443_v50 = vld [vmem:[#allocation3 + $0x84] sm:$0xf0]  ;;  %v1380_v0 = vld [vmem:[#allocation3 + $0x88] sm:$0xf0] }
 0x347   :  { %759 = vst [vmem:[#allocation3 + $0x20] sm:$0xff] %v756_v53  ;;  %v1431_v20 = vld [vmem:[#allocation3 + $0x24] sm:$0xf0] }
 0x348   :  { %758 = vst [vmem:[#allocation3 + $0x18] sm:$0xff] %v755_v57  ;;  %v1370_v57 = vld [vmem:[#allocation3 + $0x68] sm:$0xf] }
 0x349   :  { %v1642_v59 = vpop.permute.xlu0 %1641 }
 0x34a   :  { %v1644_v32 = vunpack.i.h.bf16 %v1642_v59  ;;  %v1643_v35 = vunpack.i.l.bf16 %v1642_v59 }
 0x34c   :  { %v875_v6 = vsel %vm364_vm5, %v1589_v58, %v1643_v35  ;;  %v876_v12 = vsel %vm364_vm5, %v1644_v32, %v1589_v58  ;;  %v877_v55 = vsel %vm364_vm5, %v1588_v30, %v1644_v32  ;;  %v880_v51 = vsel %vm364_vm5, %v1643_v35, %v1583_v45  ;;  %v1439_v58 = vld [vmem:[#allocation3 + $0x6c] sm:$0xf] }
 0x34d   :  { %v882_v62 = vpack.c.bf16 %v876_v12, %v877_v55  ;;  %v883_v3 = vpack.c.bf16 %v880_v51, %v875_v6  ;;  %v1091_v45 = vsel %vm1077_vm13, %v1047_v17, 0  ;;  %v1371_v32 = vor.u32 %v1442_v60, %v1370_v57 }
 0x34e   :  { %v1375_v35 = vor.u32 %v1439_v58, %v1372_v22  ;;  %v1379_v6 = vor.u32 %v1443_v50, %v1378_v61  ;;  %v1383_v12 = vor.u32 %v1440_v47, %v1380_v0 }
 0x34f   :  { %885 = vst [vmem:[#allocation3 + $0xb0] sm:$0xff] %v882_v62  ;;  %v1429_v18 = vld [vmem:[#allocation3 + $0x14] sm:$0xf0]  ;;  %v1316_v24 = vld [vmem:[#allocation3 + $0x18] sm:$0xf0] }
 0x350   :  { %886 = vst [vmem:[#allocation3 + $0xb8] sm:$0xff] %v883_v3  ;;  %v1315_v40 = vor.u32 %v1429_v18, %v1314_v48  ;;  %v1319_v14 = vor.u32 %v1426_v9, %v1316_v24  ;;  %v1434_v3 = vld [vmem:[#allocation3 + $0x44] sm:$0xf]  ;;  %v1332_v18 = vld [vmem:[#allocation3 + $0x28] sm:$0xf0] }
 0x351   :  { %v1657_v30 = vpop.permute.xlu0 %1656  ;;  %v1330_v24 = vld [vmem:[#allocation3 + $0x10] sm:$0xf] }
 0x352   :  { %v1659_v49 = vunpack.i.h.bf16 %v1657_v30  ;;  %v1658_v44 = vunpack.i.l.bf16 %v1657_v30  ;;  %1103 = vmatpush.bf16.msrb.mxu2 %v1315_v40  ;;  %1116 = vmatpush.bf16.msrb.mxu3 %v1319_v14  ;;  %v1428_v40 = vld [vmem:[#allocation3 + $0x14] sm:$0xf]  ;;  %v1430_v14 = vld [vmem:[#allocation3 + $0x1c] sm:$0xf0] }
 0x353   :  { %v1335_v30 = vor.u32 %v1428_v40, %v1332_v18 }
 0x354   :  { %v799_v46 = vsel %vm206_vm3, %v1659_v49, %v1619_v43  ;;  %v800_v27 = vsel %vm206_vm3, %v1614_v38, %v1659_v49  ;;  %v797_v56 = vsel %vm206_vm3, %v1658_v44, %v1618_v13  ;;  %v798_v26 = vsel %vm206_vm3, %v1619_v43, %v1658_v44 }
 0x355   :  { %v804_v42 = vpack.c.bf16 %v799_v46, %v800_v27  ;;  %v805_v33 = vpack.c.bf16 %v797_v56, %v798_v26  ;;  %1408 = vmatmul.msk.bf16.vlgmr.msrb.gmra.mxu2 %vm1073_vm14, %v2280_v54  ;;  %1409 = vmatmul.msk.bf16.vlgmr.msrb.gmra.mxu3 %vm1073_vm14, %v2280_v54  ;;  %v1331_v43 = vor.u32 %v1431_v20, %v1330_v24 }
 0x356   :  { %1151 = vmatpush.bf16.msra.mxu2 %v1091_v45  ;;  %1164 = vmatpush.bf16.msra.mxu3 %v1094_v2  ;;  %v1448_v38 = vld [vmem:[#allocation3 + $0xac] sm:$0xf0]  ;;  %v1396_v31 = vld [vmem:[#allocation3 + $0xb0] sm:$0xf0]  ;;  %v1324_v45 = vld [vmem:[#allocation3 + $0x20] sm:$0xf0] }
 0x357   :  { %807 = vst [vmem:[#allocation3 + $0x50] sm:$0xff] %v804_v42  ;;  %v1395_v7 = vor.u32 %v1448_v38, %v1394_v29  ;;  %v1399_v13 = vor.u32 %v1445_v4, %v1396_v31  ;;  %v1449_v34 = vld [vmem:[#allocation3 + $0xb4] sm:$0xf0]  ;;  %v1404_v36 = vld [vmem:[#allocation3 + $0xb8] sm:$0xf0] }
 0x358   :  { %808 = vst [vmem:[#allocation3 + $0x58] sm:$0xff] %v805_v33  ;;  %v1403_v37 = vor.u32 %v1449_v34, %v1402_v21  ;;  %v1407_v39 = vor.u32 %v1446_v11, %v1404_v36 }
 0x359   :  { %v718_v41 = vpop.permute.xlu0 %717  ;;  %1126 = vmatpush.bf16.msra.mxu0 %v1395_v7  ;;  %1139 = vmatpush.bf16.msra.mxu1 %v1399_v13 }
 0x35a   :  { %v727_v52 = vsel %vm71_vm0, %v718_v41, %v1663_v28  ;;  %v728_v53 = vsel %vm71_vm0, %v1629_v16, %v718_v41  ;;  %1152 = vmatpush.bf16.msra.mxu2 %v1403_v37  ;;  %1165 = vmatpush.bf16.msra.mxu3 %v1407_v39  ;;  %v1433_v28 = vld [vmem:[#allocation3 + $0x3c] sm:$0xf]  ;;  %v1354_v16 = vld [vmem:[#allocation3 + $0x40] sm:$0xf] }
 0x35b   :  { %v732_v59 = vpack.c.bf16 %v727_v52, %v728_v53 }
 0x35d   :  { %735 = vst [vmem:[#allocation3 + $0x8] sm:$0xff] %v732_v59  ;;  %1127 = vmatpush.bf16.msra.mxu0 %v1371_v32  ;;  %1140 = vmatpush.bf16.msra.mxu1 %v1375_v35 }
 0x35e   :  { %1153 = vmatpush.bf16.msra.mxu2 %v1379_v6  ;;  %1166 = vmatpush.bf16.msra.mxu3 %v1383_v12  ;;  %v1436_v15 = vld [vmem:[#allocation3 + $0x4c] sm:$0xf0]  ;;  %v1348_v23 = vld [vmem:[#allocation3 + $0x50] sm:$0xf0] }
 0x35f   :  { %v1347_v55 = vor.u32 %v1436_v15, %v1346_v25  ;;  %v1351_v51 = vor.u32 %v1433_v28, %v1348_v23  ;;  %v1437_v62 = vld [vmem:[#allocation3 + $0x54] sm:$0xf0]  ;;  %v1356_v48 = vld [vmem:[#allocation3 + $0x58] sm:$0xf0] }
 0x360   :  { %v1355_v9 = vor.u32 %v1437_v62, %v1354_v16  ;;  %v1359_v17 = vor.u32 %v1434_v3, %v1356_v48 }
 0x361   :  { %1128 = vmatpush.bf16.msra.mxu0 %v1347_v55  ;;  %1141 = vmatpush.bf16.msra.mxu1 %v1351_v51  ;;  %v1174_v51 = vld [vmem:[%s2358_s6] sm:$0xff] }
 0x362   :  { %1154 = vmatpush.bf16.msra.mxu2 %v1355_v9  ;;  %1167 = vmatpush.bf16.msra.mxu3 %v1359_v17  ;;  %v1175_v17 = vld [vmem:[%s2359_s7] sm:$0xff] }
 0x364   :  { %v1322_v49 = vld [vmem:[#allocation3 + $0x8] sm:$0xf]  ;;  %v1427_v44 = vld [vmem:[#allocation3 + $0xc] sm:$0xf] }
 0x365   :  { %v1323_v2 = vor.u32 %v1430_v14, %v1322_v49  ;;  %v1327_v46 = vor.u32 %v1427_v44, %v1324_v45 }
 0x366   :  { %1155 = vmatpush.bf16.msra.mxu2 %v1331_v43  ;;  %1168 = vmatpush.bf16.msra.mxu3 %v1335_v30 }
 0x367   :  { %1129 = vmatpush.bf16.msra.mxu0 %v1323_v2  ;;  %1142 = vmatpush.bf16.msra.mxu1 %v1327_v46 }
 0x369   :  { %1412 = vmatmul.msk.bf16.vlgmr.msra.gmra.mxu2 %vm1073_vm14, %v2280_v54  ;;  %1413 = vmatmul.msk.bf16.vlgmr.msra.gmra.mxu3 %vm1073_vm14, %v2280_v54 }
 0x36a   :  { %1410 = vmatmul.msk.bf16.vlgmr.msra.gmra.mxu0 %vm1073_vm14, %v2280_v54  ;;  %1411 = vmatmul.msk.bf16.vlgmr.msra.gmra.mxu1 %vm1073_vm14, %v2280_v54 }
 0x3d8   :  { %v2314_v27 = vpop.f32.mrf.mxu2  ;;  %v2316_v56 = vpop.f32.mrf.mxu3 }
 0x3d9   :  { %v1176_v33 = vmul.f32 %v2314_v27, %v2035_v63  ;;  %v1177_v29 = vmul.f32 %v2316_v56, %v2037_v1 }
 0x3db   :  { %v1190_v4 = vmul.f32 %v1176_v33, %v1176_v33  ;;  %v1191_v21 = vmul.f32 %v1177_v29, %v1177_v29  ;;  %v1182_v11 = vadd.f32 %v1177_v29, %v1176_v33 }
 0x3dd   :  { %v1196_v13 = vadd.f32 %v1191_v21, %v1190_v4 }
 0x3e0   :  { %v1107_v26 = vpop.f32.mrf.mxu2  ;;  %v1120_v42 = vpop.f32.mrf.mxu3 }
 0x3e7   :  { %v1131_v38 = vpop.f32.mrf.mxu0  ;;  %v1144_v31 = vpop.f32.mrf.mxu1 }
 0x3e8   :  { %v1178_v7 = vmul.f32 %v1131_v38, %v2039_v5  ;;  %v1179_v54 = vmul.f32 %v1144_v31, %v2049_v8 }
 0x3ea   :  { %v1183_v34 = vadd.f32 %v1182_v11, %v1178_v7  ;;  %v1192_v36 = vmul.f32 %v1178_v7, %v1178_v7  ;;  %v1193_v37 = vmul.f32 %v1179_v54, %v1179_v54 }
 0x3ec   :  { %v1197_v39 = vadd.f32 %v1196_v13, %v1192_v36  ;;  %v1184_v60 = vadd.f32 %v1183_v34, %v1179_v54  ;;  %v1157_v22 = vpop.f32.mrf.mxu2  ;;  %v1170_v63 = vpop.f32.mrf.mxu3 }
 0x3ed   :  { %v1180_v41 = vmul.f32 %v1157_v22, %v2055_v10  ;;  %v1181_v1 = vmul.f32 %v1170_v63, %v2057_v19 }
 0x3ee   :  { %v1198_v50 = vadd.f32 %v1197_v39, %v1193_v37 }
 0x3ef   :  { %v1194_v0 = vmul.f32 %v1180_v41, %v1180_v41  ;;  %v1133_v52 = vpop.f32.mrf.mxu0  ;;  %v1146_v53 = vpop.f32.mrf.mxu1  ;;  %v1185_v57 = vadd.f32 %v1184_v60, %v1180_v41  ;;  %v1195_v5 = vmul.f32 %v1181_v1, %v1181_v1 }
 0x3f1   :  { %v1186_v58 = vadd.f32 %v1185_v57, %v1181_v1  ;;  %v1199_v8 = vadd.f32 %v1198_v50, %v1194_v0 }
 0x3f3   :  { %1187 = vadd.xlane.f32.xlu1 %v1186_v58  ;;  %v1200_v59 = vadd.f32 %v1199_v8, %v1195_v5 }
 0x3f4   :  { %v1159_v32 = vpop.f32.mrf.mxu2  ;;  %v1172_v35 = vpop.f32.mrf.mxu3 }
 0x3f5   :  { %1201 = vadd.xlane.f32.xlu0 %v1200_v59 }
 0x466   :  { %v1188_v61 = vpop.xlane.xlu1 %1187 }
 0x467   :  { %v1189_v47 = vmul.f32 0.001953125, %v1188_v61 }
 0x468   :  { %v1202_v6 = vpop.xlane.xlu0 %1201 }
 0x469   :  { %v1204_v12 = vmul.f32 %v1189_v47, %v1189_v47  ;;  %v1203_v10 = vmul.f32 0.001953125, %v1202_v6 }
 0x46b   :  { %v1205_v25 = vsub.f32 %v1203_v10, %v1204_v12 }
 0x46d   :  { %v1206_v19 = vadd.f32 1e-05, %v1205_v25 }
 0x46f   :  { %1673 = vrsqrt.f32 %v1206_v19  ;;  %vm1213_vm0 = vweird.f32 %v1206_v19 }
 0x475   :  { %v1674_v28 = vpop.eup %1673 }
 0x476   :  { %v1208_v15 = vmul.f32 %v1674_v28, %v1206_v19  ;;  %vm1214_vm15 = vweird.f32 %v1674_v28 }
 0x477   :  { %vm1215_vm1 = vmor %vm1213_vm0, %vm1214_vm15 }
 0x478   :  { %v1209_v23 = vmul.f32 %v1674_v28, %v1208_v15 }
 0x47a   :  { %v1210_v16 = vmul.f32 0.5, %v1209_v23 }
 0x47c   :  { %v1211_v55 = vsub.f32 1.5, %v1210_v16 }
 0x47e   :  { %v1212_v62 = vmul.f32 %v1674_v28, %v1211_v55 }
 0x480   :  { %v1216_v3 = vsel %vm1215_vm1, %v1674_v28, %v1212_v62 }
 0x481   :  { %v1217_v48 = vmul.f32 %v1216_v3, %v1174_v51 }
 0x483   :  { %1222 = vperm.xlu2 %1670, %v1217_v48   ;;  %v1218_v9 = vmul.f32 %v1217_v48, %v1189_v47 }
 0x485   :  { %v1219_v20 = vsub.f32 %v1175_v17, %v1218_v9 }
 0x48b   :  { %1233 = vperm.xlu2 %1670, %v1219_v20  }
 0x4dd   :  { %v1223_v18 = vpop.permute.xlu2 %1222 }
 0x4de   :  { %v1225_v24 = vmul.f32 %v1223_v18, %v2314_v27  ;;  %v1226_v40 = vmul.f32 %v1223_v18, %v2316_v56  ;;  %v1227_v14 = vmul.f32 %v1223_v18, %v1131_v38  ;;  %v1228_v43 = vmul.f32 %v1223_v18, %v1144_v31 }
 0x4df   :  { %v1229_v30 = vmul.f32 %v1223_v18, %v1157_v22  ;;  %v1230_v49 = vmul.f32 %v1223_v18, %v1170_v63 }
 0x4e5   :  { %v1234_v44 = vpop.permute.xlu2 %1233 }
 0x4e6   :  { %v1236_v45 = vadd.f32 %v1234_v44, %v1225_v24  ;;  %v1237_v2 = vadd.f32 %v1234_v44, %v1226_v40  ;;  %v1238_v46 = vadd.f32 %v1234_v44, %v1227_v14  ;;  %v1239_v26 = vadd.f32 %v1234_v44, %v1228_v43 }
 0x4e7   :  { %v1240_v42 = vadd.f32 %v1234_v44, %v1229_v30  ;;  %v1241_v33 = vadd.f32 %v1234_v44, %v1230_v49 }
 0x4e8   :  { %v1242_v29 = vmax.f32 %v1236_v45, 0.0  ;;  %v1243_v4 = vmax.f32 %v1237_v2, 0.0  ;;  %v1244_v21 = vmax.f32 %v1238_v46, 0.0  ;;  %v1245_v11 = vmax.f32 %v1239_v26, 0.0 }
 0x4e9   :  { %v1246_v7 = vmax.f32 %v1240_v42, 0.0  ;;  %v1247_v27 = vmax.f32 %v1241_v33, 0.0 }
 0x4ea   :  { %1248 = vst [vmem:[%s2360_s8] sm:$0xff] %v1242_v29 }
 0x4eb   :  { %1249 = vst [vmem:[%s2360_s8 + $0x8] sm:$0xff] %v1243_v4 }
 0x4ec   :  { %1250 = vst [vmem:[%s2360_s8 + $0x10] sm:$0xff] %v1244_v21 }
 0x4ed   :  { %1251 = vst [vmem:[%s2360_s8 + $0x18] sm:$0xff] %v1245_v11 }
 0x4ee   :  { %1252 = vst [vmem:[%s2360_s8 + $0x20] sm:$0xff] %v1246_v7 }
 0x4ef   :  { %1253 = vst [vmem:[%s2360_s8 + $0x28] sm:$0xff] %v1247_v27 }

</bundles_post_ra>
